<compile_context>
chip_gen: v7x
topology: tpu7x:2x2x1
jax: 0.10.0
libtpu: 0.0.40
codegen_flags: <defaults>
</compile_context>

<pallas_src>
import functools

import jax
import jax.numpy as jnp
import numpy as np
from jax import lax
from jax.experimental import pallas as pl
from jax.experimental.pallas import tpu as pltpu

_EPS = 1e-14


@functools.lru_cache(maxsize=None)
def _stacked_basis(window_size: int, stride_size: int, audio_rate: int) -> np.ndarray:
    """Stacked [cos; -sin] rfft basis, hanning window + power scaling folded in.

    Built in float64 on the host (angles reduced mod M) and cast to float32.
    Returned split per chunk-slot: shape (r, 2*F_pad, S) with r = M // S,
    F_pad = round_up(M//2 + 1, 8), so each slot's slab feeds one lane-contracting
    matmul without any in-kernel lane-offset slicing of the basis.
    """
    M, S = window_size, stride_size
    r = M // S
    F = M // 2 + 1
    F_pad = ((F + 7) // 8) * 8

    w = np.hanning(M).astype(np.float64)                 # == module's hanning(M)
    k = np.arange(F, dtype=np.int64)[:, None]
    n = np.arange(M, dtype=np.int64)[None, :]
    ang = 2.0 * np.pi * ((k * n) % M).astype(np.float64) / float(M)

    scale = float(np.sum(w ** 2)) * float(audio_rate)
    bin_scale = np.full((F, 1), 2.0 / scale, dtype=np.float64)
    bin_scale[0, 0] = 1.0 / scale
    bin_scale[F - 1, 0] = 1.0 / scale
    amp = np.sqrt(bin_scale) * w[None, :]                # (F, M)

    basis = np.zeros((2 * F_pad, M), dtype=np.float64)
    basis[:F] = np.cos(ang) * amp
    basis[F_pad:F_pad + F] = -np.sin(ang) * amp
    # Split the sample axis into r chunk-slot slabs of S columns: (r, 2*F_pad, S)
    basis = basis.reshape(2 * F_pad, r, S).transpose(1, 0, 2)
    return np.ascontiguousarray(basis).astype(np.float32)


def _make_kernel(r, TN, F_pad, compute_dtype):
    dn = (((1,), (1,)), ((), ()))     # contract on the last (lane/sample) axis of both

    def finish(acc, out_ref):
        re = acc[:F_pad]
        im = acc[F_pad:]
        out_ref[...] = jnp.log(re * re + im * im + jnp.float32(_EPS))

    if r == 1:
        def kernel(basis_ref, main_ref, out_ref):
            main = main_ref[...].astype(compute_dtype)                    # (TN, S)
            acc = lax.dot_general(basis_ref[0], main, dn,
                                  preferred_element_type=jnp.float32)     # (2F_pad, TN)
            finish(acc, out_ref)
        return kernel

    def kernel(basis_ref, main_ref, halo_ref, out_ref):
        # basis_ref: (r, 2*F_pad, S) VMEM, resident (window/scale/gain folded in)
        # main_ref : (TN, S)         VMEM, auto-pipelined chunk rows of this tile
        # halo_ref : (1, r-1, S)     VMEM, the r-1 chunk rows just past the tile
        # out_ref  : (F_pad, TN)     VMEM, log power spectrogram tile (lane-dense)
        main = main_ref[...].astype(compute_dtype)                        # (TN, S)
        # Chunk-slot 0 feeds the MXU straight from the pipelined input block.
        acc = lax.dot_general(basis_ref[0], main, dn,
                              preferred_element_type=jnp.float32)         # (2F_pad, TN)
        # Slots 1..r-1: sublane-shifted views of [main ; halo] (aligned concat,
        # then a static offset slice); overlaps with the slot-0 MXU pass.
        xfull = jnp.concatenate([main, halo_ref[0].astype(compute_dtype)],
                                axis=0)                                   # (TN+r-1, S)
        for p in range(1, r):
            acc = acc + lax.dot_general(basis_ref[p], xfull[p:p + TN], dn,
                                        preferred_element_type=jnp.float32)
        finish(acc, out_ref)

    return kernel


def linear_specgram(audio,
                    stride_ms=10.0,
                    window_ms=20.0,
                    audio_rate=16000,
                    use_db_normalization=True,
                    target_db=-20.0,
                    max_gain_db=300.0,
                    tile_frames=None,
                    use_bf16_matmul=False):
    S = int(0.001 * audio_rate * stride_ms)      # stride_size
    M = int(0.001 * audio_rate * window_ms)      # window_size
    if M % S != 0:
        # TODO(synk): gather-free framing assumes window_size % stride_size == 0
        # (true for the module defaults); other configs not implemented.
        raise NotImplementedError("window_size must be a multiple of stride_size")
    r = M // S
    F = M // 2 + 1
    F_pad = ((F + 7) // 8) * 8

    audio = jnp.asarray(audio, jnp.float32)

    # --- dB normalization gain (folded into the basis: |g*B@x|^2 == g^2 |B@x|^2) ---
    if use_db_normalization:
        mean_square = jnp.maximum(jnp.mean(audio ** 2), jnp.float32(1e-30))
        rms_db = 10.0 * jnp.log10(mean_square)
        gain_db = jnp.minimum(jnp.float32(max_gain_db),
                              jnp.float32(target_db) - rms_db)
        gain = 10.0 ** (gain_db / 20.0)
    else:
        gain = jnp.float32(1.0)

    compute_dtype = jnp.bfloat16 if use_bf16_matmul else jnp.float32
    basis_np = _stacked_basis(M, S, audio_rate)                   # (r, 2*F_pad, S)
    basis = (jnp.asarray(basis_np) * gain).astype(compute_dtype)

    # --- truncate & frame bookkeeping (framing itself happens in-kernel) ---
    T = audio.shape[-1]
    truncate = (T - M) % S
    L = T - truncate
    if L < M:
        raise ValueError("audio shorter than one analysis window")
    audio = audio[:L]
    n_frames = (L - M) // S + 1

    # Tile size: aim for ~8 grid steps (pipeline depth + v7x megacore), 128..2048.
    if tile_frames is None:
        TN = -(-n_frames // 8)
    else:
        TN = int(tile_frames)
    TN = ((max(TN, 1) + 127) // 128) * 128
    TN = max(128, min(2048, TN))
    n_tiles = -(-n_frames // TN)
    n_frames_pad = n_tiles * TN

    # Non-overlapping chunks of S samples; frame j = chunk rows [j, j+r).
    n_rows = n_frames_pad + r - 1
    full = jnp.pad(audio, (0, n_rows * S - L)).reshape(n_rows, S)

    in_specs = [
        pl.BlockSpec((r, 2 * F_pad, S), lambda i: (0, 0, 0)),     # basis, resident
        pl.BlockSpec((TN, S), lambda i: (i, 0)),                  # chunk rows of tile i
    ]
    inputs = [basis, full]
    if r > 1:
        # halo[i] = chunk rows (i+1)*TN .. (i+1)*TN + r - 2 (the r-1 rows the last
        # frames of tile i need past its own block).
        idx = (jnp.arange(1, n_tiles + 1) * TN)[:, None] + jnp.arange(r - 1)[None, :]
        halo = full[idx]                                          # (n_tiles, r-1, S)
        in_specs.append(pl.BlockSpec((1, r - 1, S), lambda i: (i, 0, 0)))
        inputs.append(halo)

    cost = pl.CostEstimate(
        flops=int(2 * (2 * F_pad) * M * TN * n_tiles),
        bytes_accessed=int(4 * (n_frames_pad * S + n_tiles * (r - 1) * S
                                + basis_np.size + F_pad * n_frames_pad)),
        transcendentals=int(F_pad * n_frames_pad),
    )

    out_pad = pl.pallas_call(
        _make_kernel(r, TN, F_pad, compute_dtype),
        out_shape=jax.ShapeDtypeStruct((F_pad, n_frames_pad), jnp.float32),
        grid=(n_tiles,),
        in_specs=in_specs,
        out_specs=pl.BlockSpec((F_pad, TN), lambda i: (0, i)),
        compiler_params=pltpu.CompilerParams(
            dimension_semantics=("parallel",),
            vmem_limit_bytes=32 * 1024 * 1024,
        ),
        cost_estimate=cost,
    )(*inputs)

    return out_pad[:F, :n_frames]


if __name__ == "__main__":
    # window_size = 320, stride_size = 160 with the default module params.
    # T = 1445 -> truncate 5 samples -> 8 frames; output shape (161, 8).
    key = jax.random.PRNGKey(0)
    T = 1445
    audio = jax.random.normal(key, (T,), dtype=jnp.float32)

    out = linear_specgram(audio)
    out = jax.block_until_ready(out)

    window_size = int(0.001 * 16000 * 20.0)
    stride_size = int(0.001 * 16000 * 10.0)
    n_frames = (1440 - window_size) // stride_size + 1
    expected_shape = (window_size // 2 + 1, n_frames)
    assert out.shape == expected_shape, (out.shape, expected_shape)
    assert bool(jnp.all(jnp.isfinite(out))), "non-finite values in output"

    print("KERNEL_OK")
</pallas_src>

<mosaic_0001>
module attributes {stable_mosaic.version = 11 : i64} {
  func.func @kernel(%arg0: i32, %arg1: memref<2x336x160xf32, #tpu.memory_space<vmem>>, %arg2: memref<128x160xf32, #tpu.memory_space<vmem>>, %arg3: memref<1x1x160xf32, #tpu.memory_space<vmem>>, %arg4: memref<168x128xf32, #tpu.memory_space<vmem>>) attributes {dimension_semantics = [#tpu.dimension_semantics<parallel>], iteration_bounds = array<i64: 1>, scalar_prefetch = 0 : i64, scratch_operands = 0 : i64, tpu.core_type = #tpu.core_type<tc>, window_params = [{pipeline_mode = #tpu.pipeline_mode<synchronous>, transform_indices = @transform_0, window_bounds = array<i64: 2, 336, 160>}, {transform_indices = @transform_1, window_bounds = array<i64: 128, 160>}, {transform_indices = @transform_2, window_bounds = array<i64: 1, 1, 160>}, {transform_indices = @transform_3, window_bounds = array<i64: 168, 128>}]} {
    %c0 = arith.constant 0 : index
    %c0_0 = arith.constant 0 : index
    %0 = vector.load %arg2[%c0, %c0_0] : memref<128x160xf32, #tpu.memory_space<vmem>>, vector<128x160xf32>
    %c0_1 = arith.constant 0 : index
    %c0_2 = arith.constant 0 : index
    %c0_3 = arith.constant 0 : index
    %1 = vector.load %arg1[%c0_1, %c0_2, %c0_3] : memref<2x336x160xf32, #tpu.memory_space<vmem>>, vector<1x336x160xf32>
    %2 = vector.shape_cast %1 : vector<1x336x160xf32> to vector<336x160xf32>
    %cst = arith.constant dense<0.000000e+00> : vector<336x128xf32>
    %3 = tpu.matmul %2, %0, %cst {dimension_numbers = #tpu.dot_dimension_numbers<[1], [1], [0], [0], [0, 0, 1, 0], [], []>} : vector<336x160xf32>, vector<128x160xf32>, vector<336x128xf32> -> vector<336x128xf32>
    %c0_4 = arith.constant 0 : index
    %c0_5 = arith.constant 0 : index
    %c0_6 = arith.constant 0 : index
    %4 = vector.load %arg3[%c0_4, %c0_5, %c0_6] : memref<1x1x160xf32, #tpu.memory_space<vmem>>, vector<1x1x160xf32>
    %5 = vector.shape_cast %4 : vector<1x1x160xf32> to vector<1x160xf32>
    %6 = tpu.concatenate %0, %5 in 0 : vector<128x160xf32>, vector<1x160xf32> -> vector<129x160xf32>
    %c1 = arith.constant 1 : index
    %c0_7 = arith.constant 0 : index
    %c0_8 = arith.constant 0 : index
    %7 = vector.load %arg1[%c1, %c0_7, %c0_8] : memref<2x336x160xf32, #tpu.memory_space<vmem>>, vector<1x336x160xf32>
    %8 = vector.shape_cast %7 : vector<1x336x160xf32> to vector<336x160xf32>
    %9 = vector.extract_strided_slice %6 {offsets = [1, 0], sizes = [128, 160], strides = [1, 1]} : vector<129x160xf32> to vector<128x160xf32>
    %cst_9 = arith.constant dense<0.000000e+00> : vector<336x128xf32>
    %10 = tpu.matmul %8, %9, %cst_9 {dimension_numbers = #tpu.dot_dimension_numbers<[1], [1], [0], [0], [0, 0, 1, 0], [], []>} : vector<336x160xf32>, vector<128x160xf32>, vector<336x128xf32> -> vector<336x128xf32>
    %11 = arith.addf %3, %10 : vector<336x128xf32>
    %12 = vector.extract_strided_slice %11 {offsets = [0, 0], sizes = [168, 128], strides = [1, 1]} : vector<336x128xf32> to vector<168x128xf32>
    %13 = vector.extract_strided_slice %11 {offsets = [168, 0], sizes = [168, 128], strides = [1, 1]} : vector<336x128xf32> to vector<168x128xf32>
    %14 = arith.mulf %12, %12 : vector<168x128xf32>
    %15 = arith.mulf %13, %13 : vector<168x128xf32>
    %16 = arith.addf %14, %15 : vector<168x128xf32>
    %cst_10 = arith.constant 9.99999982E-15 : f32
    %17 = vector.broadcast %cst_10 : f32 to vector<168x128xf32>
    %18 = arith.addf %16, %17 : vector<168x128xf32>
    %19 = math.log %18 : vector<168x128xf32>
    %c0_11 = arith.constant 0 : index
    %c0_12 = arith.constant 0 : index
    %20 = vector.load %arg4[%c0_11, %c0_12] : memref<168x128xf32, #tpu.memory_space<vmem>>, vector<168x128xf32>
    tpu.vector_store %arg4[%c0_11, %c0_12], %19 {strides = array<i32>} : memref<168x128xf32, #tpu.memory_space<vmem>>, vector<168x128xf32>,
    return
  }
  func.func @transform_0(%arg0: i32) -> (i32, i32, i32) {
    %c0_i32 = arith.constant 0 : i32
    %c0_i32_0 = arith.constant 0 : i32
    %c0_i32_1 = arith.constant 0 : i32
    %c0_i32_2 = arith.constant 0 : i32
    return %c0_i32, %c0_i32_0, %c0_i32_1 : i32, i32, i32
  }
  func.func @transform_1(%arg0: i32) -> (i32, i32) {
    %c0_i32 = arith.constant 0 : i32
    %c0_i32_0 = arith.constant 0 : i32
    return %arg0, %c0_i32 : i32, i32
  }
  func.func @transform_2(%arg0: i32) -> (i32, i32, i32) {
    %c0_i32 = arith.constant 0 : i32
    %c0_i32_0 = arith.constant 0 : i32
    %c0_i32_1 = arith.constant 0 : i32
    return %arg0, %c0_i32, %c0_i32_0 : i32, i32, i32
  }
  func.func @transform_3(%arg0: i32) -> (i32, i32) {
    %c0_i32 = arith.constant 0 : i32
    %c0_i32_0 = arith.constant 0 : i32
    return %c0_i32, %arg0 : i32, i32
  }
}

</mosaic_0001>

<bundles_post_ra>
// kernel: tpu_custom_call.1
= control target key start
LH: loop header
LB: loop body
LE: loop exit
PB: predicated region body
PF: predicated region fallthrough
CT: control target
= control target key end

     0   :  { %vm341_vm0 = vcmask 261120   ;;  %vm258_vm1 = vcmask 1046528   ;;  %s2638_s0 = inlined_call_operand.vmem [shape: f32[2,336,160], index: 0, kind: input, shape index: {}]   ;;  %s2639_s1 = inlined_call_operand.vmem [shape: f32[129,160], index: 1, kind: input, shape index: {}]   ;;  %s2640_s2 = inlined_call_operand.vmem [shape: f32[1,1,160], index: 2, kind: input, shape index: {}]   ;;  %s2641_s3 = inlined_call_operand.hbm [shape: f32[168,128], index: 3, kind: output, shape index: {}]  }
   0x1   :  { %v16_v0 = vld [vmem:[%s2639_s1 + $0x8] sm:$0xff]  ;;  %v18_v1 = vld [vmem:[%s2639_s1 + $0x18] sm:$0xff]  ;;  %vm1796_vm2 = vmpackc.low %vm341_vm0, %vm341_vm0 }
   0x2   :  { %v20_v2 = vld [vmem:[%s2639_s1 + $0x28] sm:$0xff]  ;;  %v262_v3 = vrot.slane %v16_v0, 1  ;;  %v263_v4 = vrot.slane %v18_v1, 1  ;;  %v1611_v6 = vpack.c.bf16 %v18_v1, %v16_v0  ;;  %v15_v8 = vld [vmem:[%s2639_s1] sm:$0xff]  ;;  %v17_v9 = vld [vmem:[%s2639_s1 + $0x10] sm:$0xff] }
   0x3   :  { %v267_v7 = vrot.slane %v20_v2, 1  ;;  %v259_v10 = vrot.slane %v15_v8, 1  ;;  %v260_v11 = vrot.slane %v17_v9, 1  ;;  %v1614_v12 = vpack.c.bf16 %v17_v9, %v15_v8  ;;  %v19_v13 = vld [vmem:[%s2639_s1 + $0x20] sm:$0xff]  ;;  %v22_v14 = vld [vmem:[%s2639_s1 + $0x38] sm:$0xff]  ;;  %v24_v15 = vld [vmem:[%s2639_s1 + $0x48] sm:$0xff] }
   0x4   :  { %1613 = vmatprep.subr.msk.bf16.mxu0 %vm1796_vm2, %v1611_v6  ;;  %v264_v16 = vsel %vm258_vm1, %v262_v3, %v263_v4  ;;  %v265_v18 = vrot.slane %v19_v13, 1  ;;  %v271_v19 = vrot.slane %v22_v14, 1  ;;  %v21_v20 = vld [vmem:[%s2639_s1 + $0x30] sm:$0xff]  ;;  %v23_v21 = vld [vmem:[%s2639_s1 + $0x40] sm:$0xff]  ;;  %v26_v22 = vld [vmem:[%s2639_s1 + $0x58] sm:$0xff]  ;;  %v1616_v25 = vpack.c.bf16 %v22_v14, %v20_v2 }
   0x5   :  { %v268_v17 = vsel %vm258_vm1, %v263_v4, %v267_v7  ;;  %1615 = vmatpush1.bf16.xpose.msra.mxu0 %v1614_v12  ;;  %v261_v24 = vsel %vm258_vm1, %v259_v10, %v260_v11  ;;  %v275_v26 = vrot.slane %v24_v15, 1  ;;  %v28_v27 = vld [vmem:[%s2639_s1 + $0x68] sm:$0xff]  ;;  %v269_v30 = vrot.slane %v21_v20, 1  ;;  %v25_v43 = vld [vmem:[%s2639_s1 + $0x50] sm:$0xff]  ;;  %v27_v44 = vld [vmem:[%s2639_s1 + $0x60] sm:$0xff] }
   0x6   :  { %v1571_v23 = vpack.c.bf16 %v268_v17, %v264_v16  ;;  %v266_v28 = vsel %vm258_vm1, %v260_v11, %v265_v18  ;;  %v272_v29 = vsel %vm258_vm1, %v267_v7, %v271_v19  ;;  %1618 = vmatprep.subr.msk.bf16.mxu0 %vm1796_vm2, %v1616_v25  ;;  %v273_v33 = vrot.slane %v23_v21, 1  ;;  %v30_v45 = vld [vmem:[%s2639_s1 + $0x78] sm:$0xff]  ;;  %v32_v46 = vld [vmem:[%s2639_s1 + $0x88] sm:$0xff]  ;;  %v29_v61 = vld [vmem:[%s2639_s1 + $0x70] sm:$0xff] }
   0x7   :  { %v1574_v31 = vpack.c.bf16 %v266_v28, %v261_v24  ;;  %v276_v32 = vsel %vm258_vm1, %v271_v19, %v275_v26  ;;  %v279_v34 = vrot.slane %v26_v22, 1  ;;  %v283_v36 = vrot.slane %v28_v27, 1  ;;  %v48_v47 = vld [vmem:[%s2638_s0 + $0x8] sm:$0xff]  ;;  %v31_v62 = vld [vmem:[%s2639_s1 + $0x80] sm:$0xff]  ;;  %v34_v63 = vld [vmem:[%s2639_s1 + $0x98] sm:$0xff] }
   0x8   :  { %1573 = vmatprep.subr.msk.bf16.mxu1 %vm1796_vm2, %v1571_v23  ;;  %v1576_v35 = vpack.c.bf16 %v276_v32, %v272_v29  ;;  %v1619_v37 = vpack.c.bf16 %v21_v20, %v19_v13  ;;  %v270_v38 = vsel %vm258_vm1, %v265_v18, %v269_v30  ;;  %v274_v39 = vsel %vm258_vm1, %v269_v30, %v273_v33  ;;  %v1372_v48 = vld [vmem:[%s2638_s0 + $0x2a8] sm:$0xff]  ;;  %v33_v14 = vld [vmem:[%s2639_s1 + $0x90] sm:$0xff]  ;;  %v38_v16 = vld [vmem:[%s2639_s1 + $0xb8] sm:$0xff] }
   0x9   :  { %1575 = vmatpush1.bf16.xpose.msra.mxu1 %v1574_v31  ;;  %v1621_v40 = vpack.c.bf16 %v26_v22, %v24_v15  ;;  %v280_v41 = vsel %vm258_vm1, %v275_v26, %v279_v34  ;;  %v284_v42 = vsel %vm258_vm1, %v279_v34, %v283_v36  ;;  %v1579_v49 = vpack.c.bf16 %v274_v39, %v270_v38  ;;  %v36_v0 = vld [vmem:[%s2639_s1 + $0xa8] sm:$0xff]  ;;  %v35_v15 = vld [vmem:[%s2639_s1 + $0xa0] sm:$0xff]  ;;  %v37_v31 = vld [vmem:[%s2639_s1 + $0xb0] sm:$0xff] }
   0xa   :  { %1578 = vmatprep.subr.msk.bf16.mxu1 %vm1796_vm2, %v1576_v35  ;;  %1529 = vmatprep.mubr.msk.f32.mxu0 %vm341_vm0, %v48_v47  ;;  %v1581_v50 = vpack.c.bf16 %v284_v42, %v280_v41  ;;  %v277_v51 = vrot.slane %v25_v43, 1  ;;  %v281_v52 = vrot.slane %v27_v44, 1  ;;  %v287_v53 = vrot.slane %v30_v45, 1  ;;  %v40_v17 = vld [vmem:[%s2639_s1 + $0xc8] sm:$0xff]  ;;  %v39_v32 = vld [vmem:[%s2639_s1 + $0xc0] sm:$0xff]  ;;  %v42_v34 = vld [vmem:[%s2639_s1 + $0xd8] sm:$0xff] }
   0xb   :  { %1471 = vmatprep.mubr.msk.f32.mxu1 %vm341_vm0, %v1372_v48  ;;  %v291_v54 = vrot.slane %v32_v46, 1  ;;  %v1624_v55 = vpack.c.bf16 %v25_v43, %v23_v21  ;;  %v1626_v58 = vpack.c.bf16 %v30_v45, %v28_v27  ;;  %v285_v3 = vrot.slane %v29_v61, 1  ;;  %v44_v35 = vld [vmem:[%s2639_s1 + $0xe8] sm:$0xff]  ;;  %v131_v43 = vld [vmem:[%s2640_s2] sm:$0x3] }
   0xc   :  { %v278_v56 = vsel %vm258_vm1, %v273_v33, %v277_v51  ;;  %v282_v57 = vsel %vm258_vm1, %v277_v51, %v281_v52  ;;  %v288_v59 = vsel %vm258_vm1, %v283_v36, %v287_v53  ;;  %v289_v4 = vrot.slane %v31_v62, 1  ;;  %v43_v51 = vld [vmem:[%s2639_s1 + $0xe0] sm:$0xff] }
   0xd   :  { %1620 = vmatpush1.bf16.xpose.msra.mxu0 %v1619_v37  ;;  %v292_v60 = vsel %vm258_vm1, %v287_v53, %v291_v54  ;;  %v1584_v1 = vpack.c.bf16 %v282_v57, %v278_v56  ;;  %v295_v6 = vrot.slane %v34_v63, 1  ;;  %v299_v7 = vrot.slane %v36_v0, 1  ;;  %v46_v53 = vld [vmem:[%s2639_s1 + $0xf8] sm:$0xff] }
   0xe   :  { %1623 = vmatprep.subr.msk.bf16.mxu0 %vm1796_vm2, %v1621_v40  ;;  %v1586_v2 = vpack.c.bf16 %v292_v60, %v288_v59  ;;  %v1629_v8 = vpack.c.bf16 %v29_v61, %v27_v44  ;;  %v286_v9 = vsel %vm258_vm1, %v281_v52, %v285_v3  ;;  %v290_v10 = vsel %vm258_vm1, %v285_v3, %v289_v4 }
   0xf   :  { %v1631_v11 = vpack.c.bf16 %v34_v63, %v32_v46  ;;  %v296_v12 = vsel %vm258_vm1, %v291_v54, %v295_v6  ;;  %v300_v13 = vsel %vm258_vm1, %v295_v6, %v299_v7  ;;  %v1589_v18 = vpack.c.bf16 %v290_v10, %v286_v9 }
  0x10   :  { %v1591_v19 = vpack.c.bf16 %v300_v13, %v296_v12  ;;  %v293_v20 = vrot.slane %v33_v14, 1  ;;  %v297_v21 = vrot.slane %v35_v15, 1  ;;  %v303_v22 = vrot.slane %v38_v16, 1 }
  0x11   :  { %1580 = vmatpush1.bf16.xpose.msra.mxu1 %v1579_v49  ;;  %v307_v23 = vrot.slane %v40_v17, 1  ;;  %v133_v24 = vlaneseq  ;;  %v1634_v25 = vpack.c.bf16 %v33_v14, %v31_v62  ;;  %v1636_v28 = vpack.c.bf16 %v38_v16, %v36_v0 }
  0x12   :  { %1583 = vmatprep.subr.msk.bf16.mxu1 %vm1796_vm2, %v1581_v50  ;;  %v294_v26 = vsel %vm258_vm1, %v289_v4, %v293_v20  ;;  %v298_v27 = vsel %vm258_vm1, %v293_v20, %v297_v21  ;;  %v304_v29 = vsel %vm258_vm1, %v299_v7, %v303_v22  ;;  %v301_v38 = vrot.slane %v37_v31, 1  ;;  %v41_v50 = vld [vmem:[%s2639_s1 + $0xd0] sm:$0xff] }
  0x13   :  { %v308_v30 = vsel %vm258_vm1, %v303_v22, %v307_v23  ;;  %v134_v33 = vshrl.u32 %v133_v24, 7  ;;  %v1594_v36 = vpack.c.bf16 %v298_v27, %v294_v26  ;;  %v305_v39 = vrot.slane %v39_v32, 1 }
  0x14   :  { %v1596_v37 = vpack.c.bf16 %v308_v30, %v304_v29  ;;  %v311_v40 = vrot.slane %v42_v34, 1  ;;  %v315_v41 = vrot.slane %v44_v35, 1  ;;  %v1639_v44 = vpack.c.bf16 %v37_v31, %v35_v15 }
  0x15   :  { %1625 = vmatpush1.bf16.xpose.msra.mxu0 %v1624_v55  ;;  %v139_v42 = vsub.s32 1, %v134_v33  ;;  %v302_v45 = vsel %vm258_vm1, %v297_v21, %v301_v38  ;;  %v306_v46 = vsel %vm258_vm1, %v301_v38, %v305_v39  ;;  %v1641_v47 = vpack.c.bf16 %v42_v34, %v40_v17 }
  0x16   :  { %1628 = vmatprep.subr.msk.bf16.mxu0 %vm1796_vm2, %v1626_v58  ;;  %v312_v48 = vsel %vm258_vm1, %v307_v23, %v311_v40  ;;  %v316_v49 = vsel %vm258_vm1, %v311_v40, %v315_v41  ;;  %v1599_v54 = vpack.c.bf16 %v306_v46, %v302_v45  ;;  %v309_v56 = vrot.slane %v41_v50, 1 }
  0x17   :  { %v140_v52 = vrot.slane %v131_v43, %v139_v42  ;;  %v1601_v55 = vpack.c.bf16 %v316_v49, %v312_v48  ;;  %v313_v57 = vrot.slane %v43_v51, 1  ;;  %v135_v58 = vsub.s32 0, %v134_v33 }
  0x18   :  { %v319_v59 = vrot.slane %v46_v53, 1  ;;  %v1644_v61 = vpack.c.bf16 %v41_v50, %v39_v32 }
  0x19   :  { %1585 = vmatpush1.bf16.xpose.msra.mxu1 %v1584_v1  ;;  %v323_v60 = vrot.slane %v140_v52, 1 }
  0x1a   :  { %1588 = vmatprep.subr.msk.bf16.mxu1 %vm1796_vm2, %v1586_v2 }
  0x1d   :  { %1630 = vmatpush1.bf16.xpose.msra.mxu0 %v1629_v8 }
  0x1e   :  { %1633 = vmatprep.subr.msk.bf16.mxu0 %vm1796_vm2, %v1631_v11 }
  0x21   :  { %1590 = vmatpush1.bf16.xpose.msra.mxu1 %v1589_v18 }
  0x22   :  { %1593 = vmatprep.subr.msk.bf16.mxu1 %vm1796_vm2, %v1591_v19 }
  0x25   :  { %1635 = vmatpush1.bf16.xpose.msra.mxu0 %v1634_v25 }
  0x26   :  { %1638 = vmatprep.subr.msk.bf16.mxu0 %vm1796_vm2, %v1636_v28 }
  0x29   :  { %1595 = vmatpush1.bf16.xpose.msra.mxu1 %v1594_v36 }
  0x2a   :  { %1598 = vmatprep.subr.msk.bf16.mxu1 %vm1796_vm2, %v1596_v37 }
  0x2d   :  { %1640 = vmatpush1.bf16.xpose.msra.mxu0 %v1639_v44 }
  0x2e   :  { %1643 = vmatprep.subr.msk.bf16.mxu0 %vm1796_vm2, %v1641_v47 }
  0x31   :  { %1600 = vmatpush1.bf16.xpose.msra.mxu1 %v1599_v54 }
  0x32   :  { %8 = vsyncpa [#allocation3], 0  ;;  %1603 = vmatprep.subr.msk.bf16.mxu1 %vm1796_vm2, %v1601_v55  ;;  %v310_v62 = vsel %vm258_vm1, %v305_v39, %v309_v56  ;;  %v314_v63 = vsel %vm258_vm1, %v309_v56, %v313_v57  ;;  %v1646_v0 = vpack.c.bf16 %v46_v53, %v44_v35  ;;  %v136_v1 = vrot.slane %v131_v43, %v135_v58  ;;  %v45_v4 = vld [vmem:[%s2639_s1 + $0xf0] sm:$0xff]  ;;  %v47_v14 = vld [vmem:[%s2638_s0] sm:$0xff] }
  0x33   :  { %v320_v2 = vsel %vm258_vm1, %v315_v41, %v319_v59  ;;  %v324_v3 = vsel %vm258_vm1, %v319_v59, %v323_v60  ;;  %v1604_v6 = vpack.c.bf16 %v314_v63, %v310_v62  ;;  %v317_v8 = vrot.slane %v45_v4, 1  ;;  %v50_v15 = vld [vmem:[%s2638_s0 + $0x18] sm:$0xff]  ;;  %v1371_v5 = vld [vmem:[%s2638_s0 + $0x2a0] sm:$0xff]  ;;  %v49_v16 = vld [vmem:[%s2638_s0 + $0x10] sm:$0xff] }
  0x34   :  { %v1606_v7 = vpack.c.bf16 %v324_v3, %v320_v2  ;;  %v321_v9 = vrot.slane %v136_v1, 1  ;;  %v1649_v10 = vpack.c.bf16 %v45_v4, %v43_v51  ;;  %v1374_v17 = vld [vmem:[%s2638_s0 + $0x2b8] sm:$0xff]  ;;  %v52_v18 = vld [vmem:[%s2638_s0 + $0x28] sm:$0xff]  ;;  %v1373_v19 = vld [vmem:[%s2638_s0 + $0x2b0] sm:$0xff] }
  0x35   :  { %1645 = vmatpush1.bf16.xpose.msra.mxu0 %v1644_v61  ;;  %v318_v11 = vsel %vm258_vm1, %v313_v57, %v317_v8  ;;  %v51_v20 = vld [vmem:[%s2638_s0 + $0x20] sm:$0xff]  ;;  %v1376_v21 = vld [vmem:[%s2638_s0 + $0x2c8] sm:$0xff]  ;;  %v54_v22 = vld [vmem:[%s2638_s0 + $0x38] sm:$0xff] }
  0x36   :  { %1648 = vmatprep.subr.msk.bf16.mxu0 %vm1796_vm2, %v1646_v0  ;;  %v322_v12 = vsel %vm258_vm1, %v317_v8, %v321_v9  ;;  %v1375_v23 = vld [vmem:[%s2638_s0 + $0x2c0] sm:$0xff]  ;;  %v53_v24 = vld [vmem:[%s2638_s0 + $0x30] sm:$0xff]  ;;  %v1378_v25 = vld [vmem:[%s2638_s0 + $0x2d8] sm:$0xff] }
  0x37   :  { %v1609_v13 = vpack.c.bf16 %v322_v12, %v318_v11  ;;  %v56_v26 = vld [vmem:[%s2638_s0 + $0x48] sm:$0xff]  ;;  %v1377_v27 = vld [vmem:[%s2638_s0 + $0x2d0] sm:$0xff]  ;;  %v55_v28 = vld [vmem:[%s2638_s0 + $0x40] sm:$0xff] }
  0x38   :  { %v1380_v29 = vld [vmem:[%s2638_s0 + $0x2e8] sm:$0xff]  ;;  %v58_v30 = vld [vmem:[%s2638_s0 + $0x58] sm:$0xff]  ;;  %v1379_v31 = vld [vmem:[%s2638_s0 + $0x2e0] sm:$0xff] }
  0x39   :  { %1605 = vmatpush1.bf16.xpose.msra.mxu1 %v1604_v6  ;;  %v57_v32 = vld [vmem:[%s2638_s0 + $0x50] sm:$0xff]  ;;  %v1382_v33 = vld [vmem:[%s2638_s0 + $0x2f8] sm:$0xff]  ;;  %v60_v34 = vld [vmem:[%s2638_s0 + $0x68] sm:$0xff] }
  0x3a   :  { %1608 = vmatprep.subr.msk.bf16.mxu1 %vm1796_vm2, %v1606_v7  ;;  %v1381_v35 = vld [vmem:[%s2638_s0 + $0x2f0] sm:$0xff]  ;;  %v59_v36 = vld [vmem:[%s2638_s0 + $0x60] sm:$0xff]  ;;  %v1384_v37 = vld [vmem:[%s2638_s0 + $0x308] sm:$0xff] }
  0x3b   :  { %v62_v38 = vld [vmem:[%s2638_s0 + $0x78] sm:$0xff]  ;;  %v1383_v39 = vld [vmem:[%s2638_s0 + $0x300] sm:$0xff]  ;;  %v61_v40 = vld [vmem:[%s2638_s0 + $0x70] sm:$0xff] }
  0x3c   :  { %v1386_v41 = vld [vmem:[%s2638_s0 + $0x318] sm:$0xff]  ;;  %v64_v42 = vld [vmem:[%s2638_s0 + $0x88] sm:$0xff]  ;;  %v1385_v43 = vld [vmem:[%s2638_s0 + $0x310] sm:$0xff] }
  0x3d   :  { %1650 = vmatpush1.bf16.xpose.msra.mxu0 %v1649_v10  ;;  %v63_v44 = vld [vmem:[%s2638_s0 + $0x80] sm:$0xff]  ;;  %v1388_v45 = vld [vmem:[%s2638_s0 + $0x328] sm:$0xff]  ;;  %v66_v46 = vld [vmem:[%s2638_s0 + $0x98] sm:$0xff] }
  0x3e   :  { %v1387_v47 = vld [vmem:[%s2638_s0 + $0x320] sm:$0xff]  ;;  %v65_v48 = vld [vmem:[%s2638_s0 + $0x90] sm:$0xff]  ;;  %v1390_v49 = vld [vmem:[%s2638_s0 + $0x338] sm:$0xff] }
  0x3f   :  { %v68_v50 = vld [vmem:[%s2638_s0 + $0xa8] sm:$0xff]  ;;  %v1389_v51 = vld [vmem:[%s2638_s0 + $0x330] sm:$0xff]  ;;  %v67_v52 = vld [vmem:[%s2638_s0 + $0xa0] sm:$0xff] }
  0x40   :  { %v1392_v53 = vld [vmem:[%s2638_s0 + $0x348] sm:$0xff]  ;;  %v70_v54 = vld [vmem:[%s2638_s0 + $0xb8] sm:$0xff]  ;;  %v1391_v55 = vld [vmem:[%s2638_s0 + $0x340] sm:$0xff] }
  0x41   :  { %1610 = vmatpush1.bf16.xpose.msra.mxu1 %v1609_v13  ;;  %v69_v56 = vld [vmem:[%s2638_s0 + $0xb0] sm:$0xff]  ;;  %v1394_v57 = vld [vmem:[%s2638_s0 + $0x358] sm:$0xff]  ;;  %v72_v58 = vld [vmem:[%s2638_s0 + $0xc8] sm:$0xff] }
  0x42   :  { %v1393_v59 = vld [vmem:[%s2638_s0 + $0x350] sm:$0xff]  ;;  %v71_v60 = vld [vmem:[%s2638_s0 + $0xc0] sm:$0xff]  ;;  %v1396_v61 = vld [vmem:[%s2638_s0 + $0x368] sm:$0xff] }
  0x43   :  { %v74_v62 = vld [vmem:[%s2638_s0 + $0xd8] sm:$0xff]  ;;  %v1395_v63 = vld [vmem:[%s2638_s0 + $0x360] sm:$0xff]  ;;  %v73_v0 = vld [vmem:[%s2638_s0 + $0xd0] sm:$0xff] }
  0x44   :  { %998 = vmatmul.mubr.f32.vlgmr.msra.gmra.mrb[0].mxu0 %v47_v14  ;;  %v1398_v1 = vld [vmem:[%s2638_s0 + $0x378] sm:$0xff]  ;;  %v76_v2 = vld [vmem:[%s2638_s0 + $0xe8] sm:$0xff]  ;;  %v1397_v3 = vld [vmem:[%s2638_s0 + $0x370] sm:$0xff] }
  0x45   :  { %1530 = vmatprep.mubr.msk.f32.mxu0 %vm341_vm0, %v50_v15  ;;  %v75_v4 = vld [vmem:[%s2638_s0 + $0xe0] sm:$0xff]  ;;  %v1400_v6 = vld [vmem:[%s2638_s0 + $0x388] sm:$0xff]  ;;  %v78_v7 = vld [vmem:[%s2638_s0 + $0xf8] sm:$0xff] }
  0x46   :  { %v1399_v8 = vld [vmem:[%s2638_s0 + $0x380] sm:$0xff]  ;;  %v77_v9 = vld [vmem:[%s2638_s0 + $0xf0] sm:$0xff]  ;;  %v1402_v10 = vld [vmem:[%s2638_s0 + $0x398] sm:$0xff] }
  0x47   :  { %v80_v11 = vld [vmem:[%s2638_s0 + $0x108] sm:$0xff]  ;;  %v1401_v12 = vld [vmem:[%s2638_s0 + $0x390] sm:$0xff]  ;;  %v79_v13 = vld [vmem:[%s2638_s0 + $0x100] sm:$0xff] }
  0x48   :  { %565 = vmatmul.mubr.f32.vlgmr.msra.gmra.mrb[0].mxu1 %v1371_v5  ;;  %1003 = vmatmul.mubr.f32.gmra.mrb[2].mxu0 %v49_v16  ;;  %v1404_v14 = vld [vmem:[%s2638_s0 + $0x3a8] sm:$0xff]  ;;  %v82_v15 = vld [vmem:[%s2638_s0 + $0x118] sm:$0xff]  ;;  %v1403_v5 = vld [vmem:[%s2638_s0 + $0x3a0] sm:$0xff] }
  0x49   :  { %1472 = vmatprep.mubr.msk.f32.mxu1 %vm341_vm0, %v1374_v17  ;;  %1531 = vmatprep.mubr.msk.f32.mxu0 %vm341_vm0, %v52_v18  ;;  %v81_v16 = vld [vmem:[%s2638_s0 + $0x110] sm:$0xff]  ;;  %v1406_v17 = vld [vmem:[%s2638_s0 + $0x3b8] sm:$0xff]  ;;  %v84_v18 = vld [vmem:[%s2638_s0 + $0x128] sm:$0xff] }
  0x4c   :  { %570 = vmatmul.mubr.f32.gmra.mrb[2].mxu1 %v1373_v19  ;;  %1008 = vmatmul.mubr.f32.gmra.mrb[4].mxu0 %v51_v20  ;;  %v1405_v19 = vld [vmem:[%s2638_s0 + $0x3b0] sm:$0xff]  ;;  %v83_v20 = vld [vmem:[%s2638_s0 + $0x120] sm:$0xff] }
  0x4d   :  { %1473 = vmatprep.mubr.msk.f32.mxu1 %vm341_vm0, %v1376_v21  ;;  %1532 = vmatprep.mubr.msk.f32.mxu0 %vm341_vm0, %v54_v22  ;;  %v1408_v21 = vld [vmem:[%s2638_s0 + $0x3c8] sm:$0xff]  ;;  %v86_v22 = vld [vmem:[%s2638_s0 + $0x138] sm:$0xff] }
  0x50   :  { %575 = vmatmul.mubr.f32.gmra.mrb[4].mxu1 %v1375_v23  ;;  %1013 = vmatmul.mubr.f32.gmra.mrb[6].mxu0 %v53_v24  ;;  %v1407_v23 = vld [vmem:[%s2638_s0 + $0x3c0] sm:$0xff]  ;;  %v85_v24 = vld [vmem:[%s2638_s0 + $0x130] sm:$0xff] }
  0x51   :  { %1474 = vmatprep.mubr.msk.f32.mxu1 %vm341_vm0, %v1378_v25  ;;  %1533 = vmatprep.mubr.msk.f32.mxu0 %vm341_vm0, %v56_v26  ;;  %v1410_v25 = vld [vmem:[%s2638_s0 + $0x3d8] sm:$0xff]  ;;  %v88_v26 = vld [vmem:[%s2638_s0 + $0x148] sm:$0xff] }
  0x54   :  { %580 = vmatmul.mubr.f32.gmra.mrb[6].mxu1 %v1377_v27  ;;  %1018 = vmatmul.mubr.f32.gmra.mrb[8].mxu0 %v55_v28  ;;  %v1409_v27 = vld [vmem:[%s2638_s0 + $0x3d0] sm:$0xff]  ;;  %v87_v28 = vld [vmem:[%s2638_s0 + $0x140] sm:$0xff] }
  0x55   :  { %1475 = vmatprep.mubr.msk.f32.mxu1 %vm341_vm0, %v1380_v29  ;;  %1534 = vmatprep.mubr.msk.f32.mxu0 %vm341_vm0, %v58_v30  ;;  %v1412_v29 = vld [vmem:[%s2638_s0 + $0x3e8] sm:$0xff]  ;;  %v90_v30 = vld [vmem:[%s2638_s0 + $0x158] sm:$0xff] }
  0x58   :  { %585 = vmatmul.mubr.f32.gmra.mrb[8].mxu1 %v1379_v31  ;;  %1023 = vmatmul.mubr.f32.gmra.mrb[10].mxu0 %v57_v32  ;;  %v1411_v31 = vld [vmem:[%s2638_s0 + $0x3e0] sm:$0xff]  ;;  %v89_v32 = vld [vmem:[%s2638_s0 + $0x150] sm:$0xff] }
  0x59   :  { %1476 = vmatprep.mubr.msk.f32.mxu1 %vm341_vm0, %v1382_v33  ;;  %1535 = vmatprep.mubr.msk.f32.mxu0 %vm341_vm0, %v60_v34  ;;  %v1414_v33 = vld [vmem:[%s2638_s0 + $0x3f8] sm:$0xff]  ;;  %v92_v34 = vld [vmem:[%s2638_s0 + $0x168] sm:$0xff] }
  0x5c   :  { %590 = vmatmul.mubr.f32.gmra.mrb[10].mxu1 %v1381_v35  ;;  %1028 = vmatmul.mubr.f32.gmra.mrb[12].mxu0 %v59_v36  ;;  %v1413_v35 = vld [vmem:[%s2638_s0 + $0x3f0] sm:$0xff]  ;;  %v91_v36 = vld [vmem:[%s2638_s0 + $0x160] sm:$0xff] }
  0x5d   :  { %1477 = vmatprep.mubr.msk.f32.mxu1 %vm341_vm0, %v1384_v37  ;;  %1536 = vmatprep.mubr.msk.f32.mxu0 %vm341_vm0, %v62_v38  ;;  %v1416_v37 = vld [vmem:[%s2638_s0 + $0x408] sm:$0xff]  ;;  %v94_v38 = vld [vmem:[%s2638_s0 + $0x178] sm:$0xff] }
  0x60   :  { %595 = vmatmul.mubr.f32.gmra.mrb[12].mxu1 %v1383_v39  ;;  %1033 = vmatmul.mubr.f32.gmra.mrb[14].mxu0 %v61_v40  ;;  %v1415_v39 = vld [vmem:[%s2638_s0 + $0x400] sm:$0xff]  ;;  %v93_v40 = vld [vmem:[%s2638_s0 + $0x170] sm:$0xff] }
  0x61   :  { %1478 = vmatprep.mubr.msk.f32.mxu1 %vm341_vm0, %v1386_v41  ;;  %1537 = vmatprep.mubr.msk.f32.mxu0 %vm341_vm0, %v64_v42  ;;  %v1418_v41 = vld [vmem:[%s2638_s0 + $0x418] sm:$0xff]  ;;  %v96_v42 = vld [vmem:[%s2638_s0 + $0x188] sm:$0xff] }
  0x64   :  { %600 = vmatmul.mubr.f32.gmra.mrb[14].mxu1 %v1385_v43  ;;  %1038 = vmatmul.mubr.f32.gmra.mrb[16].mxu0 %v63_v44  ;;  %v1417_v43 = vld [vmem:[%s2638_s0 + $0x410] sm:$0xff]  ;;  %v95_v44 = vld [vmem:[%s2638_s0 + $0x180] sm:$0xff] }
  0x65   :  { %1479 = vmatprep.mubr.msk.f32.mxu1 %vm341_vm0, %v1388_v45  ;;  %1538 = vmatprep.mubr.msk.f32.mxu0 %vm341_vm0, %v66_v46  ;;  %v1420_v45 = vld [vmem:[%s2638_s0 + $0x428] sm:$0xff]  ;;  %v98_v46 = vld [vmem:[%s2638_s0 + $0x198] sm:$0xff] }
  0x68   :  { %605 = vmatmul.mubr.f32.gmra.mrb[16].mxu1 %v1387_v47  ;;  %1043 = vmatmul.mubr.f32.gmra.mrb[18].mxu0 %v65_v48  ;;  %v1419_v47 = vld [vmem:[%s2638_s0 + $0x420] sm:$0xff]  ;;  %v97_v48 = vld [vmem:[%s2638_s0 + $0x190] sm:$0xff] }
  0x69   :  { %1480 = vmatprep.mubr.msk.f32.mxu1 %vm341_vm0, %v1390_v49  ;;  %1539 = vmatprep.mubr.msk.f32.mxu0 %vm341_vm0, %v68_v50  ;;  %v1422_v49 = vld [vmem:[%s2638_s0 + $0x438] sm:$0xff]  ;;  %v100_v50 = vld [vmem:[%s2638_s0 + $0x1a8] sm:$0xff] }
  0x6c   :  { %610 = vmatmul.mubr.f32.gmra.mrb[18].mxu1 %v1389_v51  ;;  %1048 = vmatmul.mubr.f32.gmra.mrb[20].mxu0 %v67_v52  ;;  %v1421_v51 = vld [vmem:[%s2638_s0 + $0x430] sm:$0xff]  ;;  %v99_v52 = vld [vmem:[%s2638_s0 + $0x1a0] sm:$0xff] }
  0x6d   :  { %1481 = vmatprep.mubr.msk.f32.mxu1 %vm341_vm0, %v1392_v53  ;;  %1540 = vmatprep.mubr.msk.f32.mxu0 %vm341_vm0, %v70_v54  ;;  %v1424_v53 = vld [vmem:[%s2638_s0 + $0x448] sm:$0xff]  ;;  %v102_v54 = vld [vmem:[%s2638_s0 + $0x1b8] sm:$0xff] }
  0x70   :  { %615 = vmatmul.mubr.f32.gmra.mrb[20].mxu1 %v1391_v55  ;;  %1053 = vmatmul.mubr.f32.gmra.mrb[22].mxu0 %v69_v56  ;;  %v1423_v55 = vld [vmem:[%s2638_s0 + $0x440] sm:$0xff]  ;;  %v101_v56 = vld [vmem:[%s2638_s0 + $0x1b0] sm:$0xff] }
  0x71   :  { %1482 = vmatprep.mubr.msk.f32.mxu1 %vm341_vm0, %v1394_v57  ;;  %1541 = vmatprep.mubr.msk.f32.mxu0 %vm341_vm0, %v72_v58  ;;  %v1426_v57 = vld [vmem:[%s2638_s0 + $0x458] sm:$0xff]  ;;  %v104_v58 = vld [vmem:[%s2638_s0 + $0x1c8] sm:$0xff] }
  0x74   :  { %620 = vmatmul.mubr.f32.gmra.mrb[22].mxu1 %v1393_v59  ;;  %1058 = vmatmul.mubr.f32.gmra.mrb[24].mxu0 %v71_v60  ;;  %v1425_v59 = vld [vmem:[%s2638_s0 + $0x450] sm:$0xff]  ;;  %v103_v60 = vld [vmem:[%s2638_s0 + $0x1c0] sm:$0xff] }
  0x75   :  { %1483 = vmatprep.mubr.msk.f32.mxu1 %vm341_vm0, %v1396_v61  ;;  %1542 = vmatprep.mubr.msk.f32.mxu0 %vm341_vm0, %v74_v62  ;;  %v1428_v61 = vld [vmem:[%s2638_s0 + $0x468] sm:$0xff]  ;;  %v106_v62 = vld [vmem:[%s2638_s0 + $0x1d8] sm:$0xff] }
  0x78   :  { %625 = vmatmul.mubr.f32.gmra.mrb[24].mxu1 %v1395_v63  ;;  %1063 = vmatmul.mubr.f32.gmra.mrb[26].mxu0 %v73_v0  ;;  %v1427_v63 = vld [vmem:[%s2638_s0 + $0x460] sm:$0xff]  ;;  %v105_v0 = vld [vmem:[%s2638_s0 + $0x1d0] sm:$0xff] }
  0x79   :  { %1484 = vmatprep.mubr.msk.f32.mxu1 %vm341_vm0, %v1398_v1  ;;  %1543 = vmatprep.mubr.msk.f32.mxu0 %vm341_vm0, %v76_v2  ;;  %v1430_v1 = vld [vmem:[%s2638_s0 + $0x478] sm:$0xff]  ;;  %v108_v2 = vld [vmem:[%s2638_s0 + $0x1e8] sm:$0xff] }
  0x7c   :  { %630 = vmatmul.mubr.f32.gmra.mrb[26].mxu1 %v1397_v3  ;;  %1068 = vmatmul.mubr.f32.gmra.mrb[28].mxu0 %v75_v4  ;;  %v1429_v3 = vld [vmem:[%s2638_s0 + $0x470] sm:$0xff]  ;;  %v107_v4 = vld [vmem:[%s2638_s0 + $0x1e0] sm:$0xff] }
  0x7d   :  { %1485 = vmatprep.mubr.msk.f32.mxu1 %vm341_vm0, %v1400_v6  ;;  %1544 = vmatprep.mubr.msk.f32.mxu0 %vm341_vm0, %v78_v7  ;;  %v1432_v6 = vld [vmem:[%s2638_s0 + $0x488] sm:$0xff]  ;;  %v110_v7 = vld [vmem:[%s2638_s0 + $0x1f8] sm:$0xff] }
  0x80   :  { %635 = vmatmul.mubr.f32.gmra.mrb[28].mxu1 %v1399_v8  ;;  %1073 = vmatmul.mubr.f32.gmra.mrb[30].mxu0 %v77_v9  ;;  %v1431_v8 = vld [vmem:[%s2638_s0 + $0x480] sm:$0xff]  ;;  %v109_v9 = vld [vmem:[%s2638_s0 + $0x1f0] sm:$0xff] }
  0x81   :  { %1486 = vmatprep.mubr.msk.f32.mxu1 %vm341_vm0, %v1402_v10  ;;  %1545 = vmatprep.mubr.msk.f32.mxu0 %vm341_vm0, %v80_v11  ;;  %v1434_v10 = vld [vmem:[%s2638_s0 + $0x498] sm:$0xff]  ;;  %v112_v11 = vld [vmem:[%s2638_s0 + $0x208] sm:$0xff] }
  0x84   :  { %640 = vmatmul.mubr.f32.gmra.mrb[30].mxu1 %v1401_v12  ;;  %1078 = vmatmul.mubr.f32.gmra.mrb[32].mxu0 %v79_v13  ;;  %v1433_v12 = vld [vmem:[%s2638_s0 + $0x490] sm:$0xff]  ;;  %v111_v13 = vld [vmem:[%s2638_s0 + $0x200] sm:$0xff] }
  0x85   :  { %1487 = vmatprep.mubr.msk.f32.mxu1 %vm341_vm0, %v1404_v14  ;;  %1546 = vmatprep.mubr.msk.f32.mxu0 %vm341_vm0, %v82_v15  ;;  %v1436_v14 = vld [vmem:[%s2638_s0 + $0x4a8] sm:$0xff]  ;;  %v114_v15 = vld [vmem:[%s2638_s0 + $0x218] sm:$0xff] }
  0x88   :  { %645 = vmatmul.mubr.f32.gmra.mrb[32].mxu1 %v1403_v5  ;;  %1083 = vmatmul.mubr.f32.gmra.mrb[34].mxu0 %v81_v16  ;;  %v1435_v5 = vld [vmem:[%s2638_s0 + $0x4a0] sm:$0xff]  ;;  %v113_v16 = vld [vmem:[%s2638_s0 + $0x210] sm:$0xff] }
  0x89   :  { %1488 = vmatprep.mubr.msk.f32.mxu1 %vm341_vm0, %v1406_v17  ;;  %1547 = vmatprep.mubr.msk.f32.mxu0 %vm341_vm0, %v84_v18  ;;  %v1438_v17 = vld [vmem:[%s2638_s0 + $0x4b8] sm:$0xff]  ;;  %v116_v18 = vld [vmem:[%s2638_s0 + $0x228] sm:$0xff] }
  0x8c   :  { %650 = vmatmul.mubr.f32.gmra.mrb[34].mxu1 %v1405_v19  ;;  %1088 = vmatmul.mubr.f32.gmra.mrb[36].mxu0 %v83_v20  ;;  %v1437_v19 = vld [vmem:[%s2638_s0 + $0x4b0] sm:$0xff]  ;;  %v115_v20 = vld [vmem:[%s2638_s0 + $0x220] sm:$0xff] }
  0x8d   :  { %1489 = vmatprep.mubr.msk.f32.mxu1 %vm341_vm0, %v1408_v21  ;;  %1548 = vmatprep.mubr.msk.f32.mxu0 %vm341_vm0, %v86_v22  ;;  %v1440_v21 = vld [vmem:[%s2638_s0 + $0x4c8] sm:$0xff]  ;;  %v118_v22 = vld [vmem:[%s2638_s0 + $0x238] sm:$0xff] }
  0x90   :  { %655 = vmatmul.mubr.f32.gmra.mrb[36].mxu1 %v1407_v23  ;;  %1093 = vmatmul.mubr.f32.gmra.mrb[38].mxu0 %v85_v24  ;;  %v1439_v23 = vld [vmem:[%s2638_s0 + $0x4c0] sm:$0xff]  ;;  %v117_v24 = vld [vmem:[%s2638_s0 + $0x230] sm:$0xff] }
  0x91   :  { %1490 = vmatprep.mubr.msk.f32.mxu1 %vm341_vm0, %v1410_v25  ;;  %1549 = vmatprep.mubr.msk.f32.mxu0 %vm341_vm0, %v88_v26  ;;  %v1442_v25 = vld [vmem:[%s2638_s0 + $0x4d8] sm:$0xff]  ;;  %v120_v26 = vld [vmem:[%s2638_s0 + $0x248] sm:$0xff] }
  0x94   :  { %660 = vmatmul.mubr.f32.gmra.mrb[38].mxu1 %v1409_v27  ;;  %1098 = vmatmul.mubr.f32.gmra.mrb[40].mxu0 %v87_v28  ;;  %v1441_v27 = vld [vmem:[%s2638_s0 + $0x4d0] sm:$0xff]  ;;  %v119_v28 = vld [vmem:[%s2638_s0 + $0x240] sm:$0xff] }
  0x95   :  { %1491 = vmatprep.mubr.msk.f32.mxu1 %vm341_vm0, %v1412_v29  ;;  %1550 = vmatprep.mubr.msk.f32.mxu0 %vm341_vm0, %v90_v30  ;;  %v1444_v29 = vld [vmem:[%s2638_s0 + $0x4e8] sm:$0xff]  ;;  %v122_v30 = vld [vmem:[%s2638_s0 + $0x258] sm:$0xff] }
  0x98   :  { %665 = vmatmul.mubr.f32.gmra.mrb[40].mxu1 %v1411_v31  ;;  %1103 = vmatmul.mubr.f32.gmra.mrb[42].mxu0 %v89_v32  ;;  %v1443_v31 = vld [vmem:[%s2638_s0 + $0x4e0] sm:$0xff]  ;;  %v121_v32 = vld [vmem:[%s2638_s0 + $0x250] sm:$0xff] }
  0x99   :  { %1492 = vmatprep.mubr.msk.f32.mxu1 %vm341_vm0, %v1414_v33  ;;  %1551 = vmatprep.mubr.msk.f32.mxu0 %vm341_vm0, %v92_v34  ;;  %v1446_v33 = vld [vmem:[%s2638_s0 + $0x4f8] sm:$0xff]  ;;  %v124_v34 = vld [vmem:[%s2638_s0 + $0x268] sm:$0xff] }
  0x9c   :  { %670 = vmatmul.mubr.f32.gmra.mrb[42].mxu1 %v1413_v35  ;;  %1108 = vmatmul.mubr.f32.gmra.mrb[44].mxu0 %v91_v36  ;;  %v1445_v35 = vld [vmem:[%s2638_s0 + $0x4f0] sm:$0xff]  ;;  %v123_v36 = vld [vmem:[%s2638_s0 + $0x260] sm:$0xff] }
  0x9d   :  { %1493 = vmatprep.mubr.msk.f32.mxu1 %vm341_vm0, %v1416_v37  ;;  %1552 = vmatprep.mubr.msk.f32.mxu0 %vm341_vm0, %v94_v38  ;;  %v1448_v37 = vld [vmem:[%s2638_s0 + $0x508] sm:$0xff]  ;;  %v126_v38 = vld [vmem:[%s2638_s0 + $0x278] sm:$0xff] }
  0xa0   :  { %675 = vmatmul.mubr.f32.gmra.mrb[44].mxu1 %v1415_v39  ;;  %1113 = vmatmul.mubr.f32.gmra.mrb[46].mxu0 %v93_v40  ;;  %v1447_v39 = vld [vmem:[%s2638_s0 + $0x500] sm:$0xff]  ;;  %v125_v40 = vld [vmem:[%s2638_s0 + $0x270] sm:$0xff] }
  0xa1   :  { %1494 = vmatprep.mubr.msk.f32.mxu1 %vm341_vm0, %v1418_v41  ;;  %1553 = vmatprep.mubr.msk.f32.mxu0 %vm341_vm0, %v96_v42  ;;  %v1450_v41 = vld [vmem:[%s2638_s0 + $0x518] sm:$0xff]  ;;  %v128_v42 = vld [vmem:[%s2638_s0 + $0x288] sm:$0xff] }
  0xa4   :  { %680 = vmatmul.mubr.f32.gmra.mrb[46].mxu1 %v1417_v43  ;;  %1118 = vmatmul.mubr.f32.gmra.mrb[48].mxu0 %v95_v44  ;;  %v1449_v43 = vld [vmem:[%s2638_s0 + $0x510] sm:$0xff]  ;;  %v127_v44 = vld [vmem:[%s2638_s0 + $0x280] sm:$0xff] }
  0xa5   :  { %1495 = vmatprep.mubr.msk.f32.mxu1 %vm341_vm0, %v1420_v45  ;;  %1554 = vmatprep.mubr.msk.f32.mxu0 %vm341_vm0, %v98_v46  ;;  %v1452_v45 = vld [vmem:[%s2638_s0 + $0x528] sm:$0xff]  ;;  %v130_v46 = vld [vmem:[%s2638_s0 + $0x298] sm:$0xff] }
  0xa8   :  { %685 = vmatmul.mubr.f32.gmra.mrb[48].mxu1 %v1419_v47  ;;  %1123 = vmatmul.mubr.f32.gmra.mrb[50].mxu0 %v97_v48  ;;  %v1451_v47 = vld [vmem:[%s2638_s0 + $0x520] sm:$0xff]  ;;  %v129_v48 = vld [vmem:[%s2638_s0 + $0x290] sm:$0xff] }
  0xa9   :  { %1496 = vmatprep.mubr.msk.f32.mxu1 %vm341_vm0, %v1422_v49  ;;  %1555 = vmatprep.mubr.msk.f32.mxu0 %vm341_vm0, %v100_v50  ;;  %v1454_v49 = vld [vmem:[%s2638_s0 + $0x538] sm:$0xff]  ;;  %v1453_v50 = vld [vmem:[%s2638_s0 + $0x530] sm:$0xff]  ;;  %s1762_s0 = smov [#allocation2]  }
  0xaa   :  { %s1360_s12 = sshll.u32 %s1762_s0, 4  ;;  %s1361_s12 = int_to_ptr.vmem [resolvable:$true] %s1360_s12 }
  0xab   :  { %s1738_s13 = scalar_lea.vmem %s1361_s12, 2688  ;;  %p1743_p1 = scmp.lt.s32.totalorder %s1361_s12, %s1361_s12 }
  0xac   :  { %690 = vmatmul.mubr.f32.gmra.mrb[50].mxu1 %v1421_v51  ;;  %1128 = vmatmul.mubr.f32.gmra.mrb[52].mxu0 %v99_v52  ;;  %p1739_p0 = scmp.ne.s32.totalorder %s1361_s12, %s1738_s13  ;;  %p1744_p2 = scmp.lt.s32.totalorder %s1738_s13, %s1738_s13 }
  0xad   :  { %1497 = vmatprep.mubr.msk.f32.mxu1 %vm341_vm0, %v1424_v53  ;;  %1556 = vmatprep.mubr.msk.f32.mxu0 %vm341_vm0, %v102_v54 }
  0xae   :  { %p1745_p3 = por %p1744_p2, %p1743_p1 }
  0xb0   :  { %695 = vmatmul.mubr.f32.gmra.mrb[52].mxu1 %v1423_v55  ;;  %1133 = vmatmul.mubr.f32.gmra.mrb[54].mxu0 %v101_v56  ;;  %p1746_p4 = pnand %p1745_p3, %p1739_p0 }
  0xb1   :  { %1498 = vmatprep.mubr.msk.f32.mxu1 %vm341_vm0, %v1426_v57  ;;  %1557 = vmatprep.mubr.msk.f32.mxu0 %vm341_vm0, %v104_v58 }
  0xb4   :  { %700 = vmatmul.mubr.f32.gmra.mrb[54].mxu1 %v1425_v59  ;;  %1138 = vmatmul.mubr.f32.gmra.mrb[56].mxu0 %v103_v60 }
  0xb5   :  { %1499 = vmatprep.mubr.msk.f32.mxu1 %vm341_vm0, %v1428_v61  ;;  %1558 = vmatprep.mubr.msk.f32.mxu0 %vm341_vm0, %v106_v62 }
  0xb8   :  { %705 = vmatmul.mubr.f32.gmra.mrb[56].mxu1 %v1427_v63  ;;  %1143 = vmatmul.mubr.f32.gmra.mrb[58].mxu0 %v105_v0 }
  0xb9   :  { %1500 = vmatprep.mubr.msk.f32.mxu1 %vm341_vm0, %v1430_v1  ;;  %1559 = vmatprep.mubr.msk.f32.mxu0 %vm341_vm0, %v108_v2 }
  0xbc   :  { %710 = vmatmul.mubr.f32.gmra.mrb[58].mxu1 %v1429_v3  ;;  %1148 = vmatmul.mubr.f32.gmra.mrb[60].mxu0 %v107_v4 }
  0xbd   :  { %1501 = vmatprep.mubr.msk.f32.mxu1 %vm341_vm0, %v1432_v6  ;;  %1560 = vmatprep.mubr.msk.f32.mxu0 %vm341_vm0, %v110_v7 }
  0xc0   :  { %715 = vmatmul.mubr.f32.gmra.mrb[60].mxu1 %v1431_v8  ;;  %1153 = vmatmul.mubr.f32.gmra.mrb[62].mxu0 %v109_v9 }
  0xc1   :  { %1502 = vmatprep.mubr.msk.f32.mxu1 %vm341_vm0, %v1434_v10  ;;  %1561 = vmatprep.mubr.msk.f32.mxu0 %vm341_vm0, %v112_v11 }
  0xc4   :  { %720 = vmatmul.mubr.f32.gmra.mrb[62].mxu1 %v1433_v12  ;;  %1158 = vmatmul.mubr.f32.gmra.mrb[64].mxu0 %v111_v13 }
  0xc5   :  { %1503 = vmatprep.mubr.msk.f32.mxu1 %vm341_vm0, %v1436_v14  ;;  %1562 = vmatprep.mubr.msk.f32.mxu0 %vm341_vm0, %v114_v15 }
  0xc8   :  { %725 = vmatmul.mubr.f32.gmra.mrb[64].mxu1 %v1435_v5  ;;  %1163 = vmatmul.mubr.f32.gmra.mrb[66].mxu0 %v113_v16 }
  0xc9   :  { %1504 = vmatprep.mubr.msk.f32.mxu1 %vm341_vm0, %v1438_v17  ;;  %1563 = vmatprep.mubr.msk.f32.mxu0 %vm341_vm0, %v116_v18 }
  0xcc   :  { %730 = vmatmul.mubr.f32.gmra.mrb[66].mxu1 %v1437_v19  ;;  %1168 = vmatmul.mubr.f32.gmra.mrb[68].mxu0 %v115_v20 }
  0xcd   :  { %1505 = vmatprep.mubr.msk.f32.mxu1 %vm341_vm0, %v1440_v21  ;;  %1564 = vmatprep.mubr.msk.f32.mxu0 %vm341_vm0, %v118_v22 }
  0xd0   :  { %735 = vmatmul.mubr.f32.gmra.mrb[68].mxu1 %v1439_v23  ;;  %1173 = vmatmul.mubr.f32.gmra.mrb[70].mxu0 %v117_v24 }
  0xd1   :  { %1506 = vmatprep.mubr.msk.f32.mxu1 %vm341_vm0, %v1442_v25  ;;  %1565 = vmatprep.mubr.msk.f32.mxu0 %vm341_vm0, %v120_v26 }
  0xd4   :  { %740 = vmatmul.mubr.f32.gmra.mrb[70].mxu1 %v1441_v27  ;;  %1178 = vmatmul.mubr.f32.gmra.mrb[72].mxu0 %v119_v28 }
  0xd5   :  { %1507 = vmatprep.mubr.msk.f32.mxu1 %vm341_vm0, %v1444_v29  ;;  %1566 = vmatprep.mubr.msk.f32.mxu0 %vm341_vm0, %v122_v30 }
  0xd8   :  { %745 = vmatmul.mubr.f32.gmra.mrb[72].mxu1 %v1443_v31  ;;  %1183 = vmatmul.mubr.f32.gmra.mrb[74].mxu0 %v121_v32 }
  0xd9   :  { %1508 = vmatprep.mubr.msk.f32.mxu1 %vm341_vm0, %v1446_v33  ;;  %1567 = vmatprep.mubr.msk.f32.mxu0 %vm341_vm0, %v124_v34 }
  0xdc   :  { %750 = vmatmul.mubr.f32.gmra.mrb[74].mxu1 %v1445_v35  ;;  %1188 = vmatmul.mubr.f32.gmra.mrb[76].mxu0 %v123_v36 }
  0xdd   :  { %1509 = vmatprep.mubr.msk.f32.mxu1 %vm341_vm0, %v1448_v37  ;;  %1568 = vmatprep.mubr.msk.f32.mxu0 %vm341_vm0, %v126_v38 }
  0xe0   :  { %755 = vmatmul.mubr.f32.gmra.mrb[76].mxu1 %v1447_v39  ;;  %1193 = vmatmul.mubr.f32.gmra.mrb[78].mxu0 %v125_v40 }
  0xe1   :  { %1510 = vmatprep.mubr.msk.f32.mxu1 %vm341_vm0, %v1450_v41  ;;  %1569 = vmatprep.mubr.msk.f32.mxu0 %vm341_vm0, %v128_v42 }
  0xe4   :  { %760 = vmatmul.mubr.f32.gmra.mrb[78].mxu1 %v1449_v43  ;;  %1198 = vmatmul.mubr.f32.gmra.mrb[80].mxu0 %v127_v44 }
  0xe5   :  { %1511 = vmatprep.mubr.msk.f32.mxu1 %vm341_vm0, %v1452_v45  ;;  %1570 = vmatprep.mubr.msk.f32.mxu0 %vm341_vm0, %v130_v46 }
  0xe8   :  { %765 = vmatmul.mubr.f32.gmra.mrb[80].mxu1 %v1451_v47  ;;  %1203 = vmatmul.mubr.f32.gmra.mrb[82].mxu0 %v129_v48 }
  0xe9   :  { %1512 = vmatprep.mubr.msk.f32.mxu1 %vm341_vm0, %v1454_v49 }
  0xec   :  { %770 = vmatmul.mubr.f32.gmra.mrb[82].mxu1 %v1453_v50 }
 0x117   :  { %v999_v51 = vpop.f32.mrb[0].mxu0 }
 0x118   :  { %v1001_v52 = vpop.f32.mrb[1].mxu0 }
 0x11b   :  { %v566_v53 = vpop.f32.mrb[0].mxu1  ;;  %v1004_v54 = vpop.f32.mrb[2].mxu0 }
 0x11c   :  { %v2542_v55 = vadd.f32 %v999_v51, %v566_v53  ;;  %v568_v56 = vpop.f32.mrb[1].mxu1  ;;  %v1006_v57 = vpop.f32.mrb[3].mxu0 }
 0x11f   :  { %v571_v58 = vpop.f32.mrb[2].mxu1  ;;  %v1009_v59 = vpop.f32.mrb[4].mxu0 }
 0x120   :  { %v2544_v60 = vadd.f32 %v1004_v54, %v571_v58  ;;  %v573_v61 = vpop.f32.mrb[3].mxu1  ;;  %v1011_v62 = vpop.f32.mrb[5].mxu0 }
 0x123   :  { %v576_v63 = vpop.f32.mrb[4].mxu1  ;;  %v1014_v0 = vpop.f32.mrb[6].mxu0 }
 0x124   :  { %v2546_v1 = vadd.f32 %v1009_v59, %v576_v63  ;;  %v578_v2 = vpop.f32.mrb[5].mxu1  ;;  %v1016_v3 = vpop.f32.mrb[7].mxu0 }
 0x127   :  { %v581_v4 = vpop.f32.mrb[6].mxu1  ;;  %v1019_v6 = vpop.f32.mrb[8].mxu0 }
 0x128   :  { %v2548_v7 = vadd.f32 %v1014_v0, %v581_v4  ;;  %v583_v8 = vpop.f32.mrb[7].mxu1  ;;  %v1021_v9 = vpop.f32.mrb[9].mxu0 }
 0x12b   :  { %v586_v10 = vpop.f32.mrb[8].mxu1  ;;  %v1024_v11 = vpop.f32.mrb[10].mxu0 }
 0x12c   :  { %v2550_v12 = vadd.f32 %v1019_v6, %v586_v10  ;;  %v588_v13 = vpop.f32.mrb[9].mxu1  ;;  %v1026_v14 = vpop.f32.mrb[11].mxu0 }
 0x12f   :  { %v591_v15 = vpop.f32.mrb[10].mxu1  ;;  %v1029_v5 = vpop.f32.mrb[12].mxu0 }
 0x130   :  { %v2552_v16 = vadd.f32 %v1024_v11, %v591_v15  ;;  %v593_v17 = vpop.f32.mrb[11].mxu1  ;;  %v1031_v18 = vpop.f32.mrb[13].mxu0 }
 0x133   :  { %v596_v19 = vpop.f32.mrb[12].mxu1  ;;  %v1034_v20 = vpop.f32.mrb[14].mxu0 }
 0x134   :  { %v2554_v21 = vadd.f32 %v1029_v5, %v596_v19  ;;  %v598_v22 = vpop.f32.mrb[13].mxu1  ;;  %v1036_v23 = vpop.f32.mrb[15].mxu0 }
 0x137   :  { %v601_v24 = vpop.f32.mrb[14].mxu1  ;;  %v1039_v25 = vpop.f32.mrb[16].mxu0 }
 0x138   :  { %v2556_v26 = vadd.f32 %v1034_v20, %v601_v24  ;;  %v603_v27 = vpop.f32.mrb[15].mxu1  ;;  %v1041_v28 = vpop.f32.mrb[17].mxu0 }
 0x13b   :  { %v606_v29 = vpop.f32.mrb[16].mxu1  ;;  %v1044_v30 = vpop.f32.mrb[18].mxu0 }
 0x13c   :  { %v2558_v31 = vadd.f32 %v1039_v25, %v606_v29  ;;  %v608_v32 = vpop.f32.mrb[17].mxu1  ;;  %v1046_v33 = vpop.f32.mrb[19].mxu0 }
 0x13f   :  { %v611_v34 = vpop.f32.mrb[18].mxu1  ;;  %v1049_v35 = vpop.f32.mrb[20].mxu0 }
 0x140   :  { %v2560_v36 = vadd.f32 %v1044_v30, %v611_v34  ;;  %v613_v37 = vpop.f32.mrb[19].mxu1  ;;  %v1051_v38 = vpop.f32.mrb[21].mxu0 }
 0x143   :  { %v616_v39 = vpop.f32.mrb[20].mxu1  ;;  %v1054_v40 = vpop.f32.mrb[22].mxu0 }
 0x144   :  { %v2562_v41 = vadd.f32 %v1049_v35, %v616_v39  ;;  %v618_v42 = vpop.f32.mrb[21].mxu1  ;;  %v1056_v43 = vpop.f32.mrb[23].mxu0 }
 0x147   :  { %v621_v44 = vpop.f32.mrb[22].mxu1  ;;  %v1059_v45 = vpop.f32.mrb[24].mxu0 }
 0x148   :  { %v2564_v46 = vadd.f32 %v1054_v40, %v621_v44  ;;  %v623_v47 = vpop.f32.mrb[23].mxu1  ;;  %v1061_v48 = vpop.f32.mrb[25].mxu0 }
 0x149   :  { %v1208_v47 = vmul.f32 %v2542_v55, %v2542_v55  ;;  %v1210_v55 = vmul.f32 %v2546_v1, %v2546_v1 }
 0x14b   :  { %v626_v49 = vpop.f32.mrb[24].mxu1  ;;  %v1064_v50 = vpop.f32.mrb[26].mxu0 }
 0x14c   :  { %v2566_v51 = vadd.f32 %v1059_v45, %v626_v49  ;;  %v628_v52 = vpop.f32.mrb[25].mxu1  ;;  %v1066_v53 = vpop.f32.mrb[27].mxu0 }
 0x14f   :  { %v631_v54 = vpop.f32.mrb[26].mxu1  ;;  %v1069_v56 = vpop.f32.mrb[28].mxu0 }
 0x150   :  { %v2568_v57 = vadd.f32 %v1064_v50, %v631_v54  ;;  %v633_v58 = vpop.f32.mrb[27].mxu1  ;;  %v1071_v59 = vpop.f32.mrb[29].mxu0 }
 0x151   :  { %v1209_v58 = vmul.f32 %v2544_v60, %v2544_v60 }
 0x153   :  { %v636_v61 = vpop.f32.mrb[28].mxu1  ;;  %v1074_v62 = vpop.f32.mrb[30].mxu0 }
 0x154   :  { %v2570_v63 = vadd.f32 %v1069_v56, %v636_v61  ;;  %v638_v0 = vpop.f32.mrb[29].mxu1  ;;  %v1076_v2 = vpop.f32.mrb[31].mxu0 }
 0x157   :  { %v641_v3 = vpop.f32.mrb[30].mxu1  ;;  %v1079_v4 = vpop.f32.mrb[32].mxu0 }
 0x158   :  { %v2572_v6 = vadd.f32 %v1074_v62, %v641_v3  ;;  %v643_v8 = vpop.f32.mrb[31].mxu1  ;;  %v1081_v9 = vpop.f32.mrb[33].mxu0 }
 0x15b   :  { %v646_v10 = vpop.f32.mrb[32].mxu1  ;;  %v1084_v11 = vpop.f32.mrb[34].mxu0 }
 0x15c   :  { %v2574_v13 = vadd.f32 %v1079_v4, %v646_v10  ;;  %v648_v14 = vpop.f32.mrb[33].mxu1  ;;  %v1086_v15 = vpop.f32.mrb[35].mxu0 }
 0x15f   :  { %v651_v5 = vpop.f32.mrb[34].mxu1  ;;  %v1089_v17 = vpop.f32.mrb[36].mxu0 }
 0x160   :  { %v2576_v18 = vadd.f32 %v1084_v11, %v651_v5  ;;  %v653_v19 = vpop.f32.mrb[35].mxu1  ;;  %v1091_v20 = vpop.f32.mrb[37].mxu0 }
 0x161   :  { %v1211_v19 = vmul.f32 %v2548_v7, %v2548_v7 }
 0x163   :  { %v656_v22 = vpop.f32.mrb[36].mxu1  ;;  %v1094_v23 = vpop.f32.mrb[38].mxu0 }
 0x164   :  { %v2578_v24 = vadd.f32 %v1089_v17, %v656_v22  ;;  %v658_v25 = vpop.f32.mrb[37].mxu1  ;;  %v1096_v27 = vpop.f32.mrb[39].mxu0 }
 0x167   :  { %v661_v28 = vpop.f32.mrb[38].mxu1  ;;  %v1099_v29 = vpop.f32.mrb[40].mxu0 }
 0x168   :  { %v2580_v30 = vadd.f32 %v1094_v23, %v661_v28  ;;  %v663_v32 = vpop.f32.mrb[39].mxu1  ;;  %v1101_v33 = vpop.f32.mrb[41].mxu0 }
 0x169   :  { %v1212_v33 = vmul.f32 %v2550_v12, %v2550_v12 }
 0x16b   :  { %v666_v34 = vpop.f32.mrb[40].mxu1  ;;  %v1104_v35 = vpop.f32.mrb[42].mxu0 }
 0x16c   :  { %v2582_v37 = vadd.f32 %v1099_v29, %v666_v34  ;;  %v668_v38 = vpop.f32.mrb[41].mxu1  ;;  %v1106_v39 = vpop.f32.mrb[43].mxu0 }
 0x16f   :  { %v671_v40 = vpop.f32.mrb[42].mxu1  ;;  %v1109_v42 = vpop.f32.mrb[44].mxu0 }
 0x170   :  { %v1105_v43 = vadd.f32 %v1104_v35, %v671_v40  ;;  %v673_v44 = vpop.f32.mrb[43].mxu1  ;;  %v1111_v45 = vpop.f32.mrb[45].mxu0 }
 0x172   :  { %v1229_v48 = vmul.f32 %v1105_v43, %v1105_v43 }
 0x173   :  { %v676_v49 = vpop.f32.mrb[44].mxu1  ;;  %v1114_v50 = vpop.f32.mrb[46].mxu0 }
 0x174   :  { %v1250_v52 = vadd.f32 %v1229_v48, %v1208_v47  ;;  %v1110_v53 = vadd.f32 %v1109_v42, %v676_v49  ;;  %v678_v54 = vpop.f32.mrb[45].mxu1  ;;  %v1116_v56 = vpop.f32.mrb[47].mxu0  ;;  %v1213_v47 = vmul.f32 %v2552_v16, %v2552_v16 }
 0x176   :  { %v1271_v59 = vadd.f32 1e-14, %v1250_v52  ;;  %v1230_v61 = vmul.f32 %v1110_v53, %v1110_v53 }
 0x177   :  { %v681_v62 = vpop.f32.mrb[46].mxu1  ;;  %v1119_v0 = vpop.f32.mrb[48].mxu0 }
 0x178   :  { %1696 = vlog2.f32 %v1271_v59  ;;  %v1251_v2 = vadd.f32 %v1230_v61, %v1209_v58  ;;  %v1115_v3 = vadd.f32 %v1114_v50, %v681_v62  ;;  %v683_v4 = vpop.f32.mrb[47].mxu1  ;;  %v1121_v8 = vpop.f32.mrb[49].mxu0  ;;  %v1214_v61 = vmul.f32 %v2554_v21, %v2554_v21 }
 0x17a   :  { %v1272_v9 = vadd.f32 1e-14, %v1251_v2  ;;  %v1231_v10 = vmul.f32 %v1115_v3, %v1115_v3 }
 0x17b   :  { %v686_v11 = vpop.f32.mrb[48].mxu1  ;;  %v1124_v14 = vpop.f32.mrb[50].mxu0 }
 0x17c   :  { %1698 = vlog2.f32 %v1272_v9  ;;  %v1252_v15 = vadd.f32 %v1231_v10, %v1210_v55  ;;  %v1120_v5 = vadd.f32 %v1119_v0, %v686_v11  ;;  %v688_v60 = vpop.f32.mrb[49].mxu1  ;;  %v1126_v17 = vpop.f32.mrb[51].mxu0  ;;  %v1215_v11 = vmul.f32 %v2556_v26, %v2556_v26 }
 0x17e   :  { %v1273_v20 = vadd.f32 1e-14, %v1252_v15  ;;  %v1232_v22 = vmul.f32 %v1120_v5, %v1120_v5 }
 0x17f   :  { %v691_v23 = vpop.f32.mrb[50].mxu1  ;;  %v1129_v25 = vpop.f32.mrb[52].mxu0 }
 0x180   :  { %1700 = vlog2.f32 %v1273_v20  ;;  %v1253_v27 = vadd.f32 %v1232_v22, %v1211_v19  ;;  %v1125_v28 = vadd.f32 %v1124_v14, %v691_v23  ;;  %v693_v1 = vpop.f32.mrb[51].mxu1  ;;  %v1131_v29 = vpop.f32.mrb[53].mxu0 }
 0x182   :  { %v1697_v32 = vpop.eup %1696  ;;  %v1274_v34 = vadd.f32 1e-14, %v1253_v27  ;;  %v1233_v35 = vmul.f32 %v1125_v28, %v1125_v28 }
 0x183   :  { %v1293_v38 = vmul.f32 0.6931472, %v1697_v32  ;;  %v696_v39 = vpop.f32.mrb[52].mxu1  ;;  %v1134_v40 = vpop.f32.mrb[54].mxu0 }
 0x184   :  { %1702 = vlog2.f32 %v1274_v34  ;;  %v1254_v7 = vadd.f32 %v1233_v35, %v1212_v33  ;;  %v1130_v42 = vadd.f32 %v1129_v25, %v696_v39  ;;  %v698_v43 = vpop.f32.mrb[53].mxu1  ;;  %v1136_v44 = vpop.f32.mrb[55].mxu0  ;;  %v1216_v25 = vmul.f32 %v2558_v31, %v2558_v31 }
 0x185   :  { %1334 = vst [vmem:[#allocation2] sm:$0xff] %v1293_v38  ;;  %v1217_v39 = vmul.f32 %v2560_v36, %v2560_v36 }
 0x186   :  { %v1699_v45 = vpop.eup %1698  ;;  %v1275_v48 = vadd.f32 1e-14, %v1254_v7  ;;  %v1234_v49 = vmul.f32 %v1130_v42, %v1130_v42 }
 0x187   :  { %v1295_v50 = vmul.f32 0.6931472, %v1699_v45  ;;  %v701_v52 = vpop.f32.mrb[54].mxu1  ;;  %v1139_v12 = vpop.f32.mrb[56].mxu0 }
 0x188   :  { %1704 = vlog2.f32 %v1275_v48  ;;  %v1255_v53 = vadd.f32 %v1234_v49, %v1213_v47  ;;  %v1135_v54 = vadd.f32 %v1134_v40, %v701_v52  ;;  %v703_v56 = vpop.f32.mrb[55].mxu1  ;;  %v1141_v58 = vpop.f32.mrb[57].mxu0 }
 0x189   :  { %1335 = vst [vmem:[#allocation2 + $0x8] sm:$0xff] %v1295_v50  ;;  %v1218_v50 = vmul.f32 %v2562_v41, %v2562_v41 }
 0x18a   :  { %v1701_v59 = vpop.eup %1700  ;;  %v1276_v62 = vadd.f32 1e-14, %v1255_v53  ;;  %v1235_v0 = vmul.f32 %v1135_v54, %v1135_v54 }
 0x18b   :  { %v1297_v2 = vmul.f32 0.6931472, %v1701_v59  ;;  %v706_v3 = vpop.f32.mrb[56].mxu1  ;;  %v1144_v16 = vpop.f32.mrb[58].mxu0 }
 0x18c   :  { %1706 = vlog2.f32 %v1276_v62  ;;  %v1256_v4 = vadd.f32 %v1235_v0, %v1214_v61  ;;  %v1140_v8 = vadd.f32 %v1139_v12, %v706_v3  ;;  %v708_v55 = vpop.f32.mrb[57].mxu1  ;;  %v1146_v9 = vpop.f32.mrb[59].mxu0  ;;  %v1219_v0 = vmul.f32 %v2564_v46, %v2564_v46 }
 0x18d   :  { %1336 = vst [vmem:[#allocation2 + $0x10] sm:$0xff] %v1297_v2 }
 0x18e   :  { %v1703_v10 = vpop.eup %1702  ;;  %v1277_v14 = vadd.f32 1e-14, %v1256_v4  ;;  %v1236_v15 = vmul.f32 %v1140_v8, %v1140_v8 }
 0x18f   :  { %v1299_v5 = vmul.f32 0.6931472, %v1703_v10  ;;  %v711_v60 = vpop.f32.mrb[58].mxu1  ;;  %v1149_v21 = vpop.f32.mrb[60].mxu0 }
 0x190   :  { %1708 = vlog2.f32 %v1277_v14  ;;  %v1257_v17 = vadd.f32 %v1236_v15, %v1215_v11  ;;  %v1145_v19 = vadd.f32 %v1144_v16, %v711_v60  ;;  %v713_v20 = vpop.f32.mrb[59].mxu1  ;;  %v1151_v22 = vpop.f32.mrb[61].mxu0  ;;  %v1220_v14 = vmul.f32 %v2566_v51, %v2566_v51 }
 0x191   :  { %1337 = vst [vmem:[#allocation2 + $0x18] sm:$0xff] %v1299_v5 }
 0x192   :  { %v1705_v23 = vpop.eup %1704  ;;  %v1278_v27 = vadd.f32 1e-14, %v1257_v17  ;;  %v1237_v28 = vmul.f32 %v1145_v19, %v1145_v19 }
 0x193   :  { %v1301_v1 = vmul.f32 0.6931472, %v1705_v23  ;;  %v716_v29 = vpop.f32.mrb[60].mxu1  ;;  %v1154_v26 = vpop.f32.mrb[62].mxu0 }
 0x194   :  { %1710 = vlog2.f32 %v1278_v27  ;;  %v1258_v32 = vadd.f32 %v1237_v28, %v1216_v25  ;;  %v1150_v33 = vadd.f32 %v1149_v21, %v716_v29  ;;  %v718_v34 = vpop.f32.mrb[61].mxu1  ;;  %v1156_v35 = vpop.f32.mrb[63].mxu0  ;;  %v1221_v25 = vmul.f32 %v2568_v57, %v2568_v57 }
 0x195   :  { %1338 = vst [vmem:[#allocation2 + $0x20] sm:$0xff] %v1301_v1 }
 0x196   :  { %v1707_v38 = vpop.eup %1706  ;;  %v1279_v40 = vadd.f32 1e-14, %v1258_v32  ;;  %v1238_v7 = vmul.f32 %v1150_v33, %v1150_v33 }
 0x197   :  { %v1303_v42 = vmul.f32 0.6931472, %v1707_v38  ;;  %v721_v43 = vpop.f32.mrb[62].mxu1  ;;  %v1159_v31 = vpop.f32.mrb[64].mxu0  ;;  %v1222_v38 = vmul.f32 %v2570_v63, %v2570_v63 }
 0x198   :  { %1712 = vlog2.f32 %v1279_v40  ;;  %v1259_v44 = vadd.f32 %v1238_v7, %v1217_v39  ;;  %v1155_v45 = vadd.f32 %v1154_v26, %v721_v43  ;;  %v723_v47 = vpop.f32.mrb[63].mxu1  ;;  %v1161_v48 = vpop.f32.mrb[65].mxu0 }
 0x199   :  { %1339 = vst [vmem:[#allocation2 + $0x28] sm:$0xff] %v1303_v42  ;;  %v1223_v48 = vmul.f32 %v2572_v6, %v2572_v6 }
 0x19a   :  { %v1709_v49 = vpop.eup %1708  ;;  %v1280_v52 = vadd.f32 1e-14, %v1259_v44  ;;  %v1239_v12 = vmul.f32 %v1155_v45, %v1155_v45 }
 0x19b   :  { %v1305_v53 = vmul.f32 0.6931472, %v1709_v49  ;;  %v726_v54 = vpop.f32.mrb[64].mxu1  ;;  %v1164_v36 = vpop.f32.mrb[66].mxu0 }
 0x19c   :  { %1714 = vlog2.f32 %v1280_v52  ;;  %v1260_v56 = vadd.f32 %v1239_v12, %v1218_v50  ;;  %v1160_v58 = vadd.f32 %v1159_v31, %v726_v54  ;;  %v728_v59 = vpop.f32.mrb[65].mxu1  ;;  %v1166_v61 = vpop.f32.mrb[67].mxu0 }
 0x19d   :  { %1340 = vst [vmem:[#allocation2 + $0x30] sm:$0xff] %v1305_v53  ;;  %v1224_v59 = vmul.f32 %v2574_v13, %v2574_v13 }
 0x19e   :  { %v1711_v62 = vpop.eup %1710  ;;  %v1281_v2 = vadd.f32 1e-14, %v1260_v56  ;;  %v1240_v3 = vmul.f32 %v1160_v58, %v1160_v58 }
 0x19f   :  { %v1307_v16 = vmul.f32 0.6931472, %v1711_v62  ;;  %v731_v4 = vpop.f32.mrb[66].mxu1  ;;  %v1169_v41 = vpop.f32.mrb[68].mxu0 }
 0x1a0   :  { %1716 = vlog2.f32 %v1281_v2  ;;  %v1261_v8 = vadd.f32 %v1240_v3, %v1219_v0  ;;  %v1165_v55 = vadd.f32 %v1164_v36, %v731_v4  ;;  %v733_v9 = vpop.f32.mrb[67].mxu1  ;;  %v1171_v10 = vpop.f32.mrb[69].mxu0 }
 0x1a1   :  { %1341 = vst [vmem:[#allocation2 + $0x38] sm:$0xff] %v1307_v16 }
 0x1a2   :  { %v1713_v11 = vpop.eup %1712  ;;  %v1282_v15 = vadd.f32 1e-14, %v1261_v8  ;;  %v1241_v5 = vmul.f32 %v1165_v55, %v1165_v55  ;;  %v1225_v55 = vmul.f32 %v2576_v18, %v2576_v18 }
 0x1a3   :  { %v1309_v60 = vmul.f32 0.6931472, %v1713_v11  ;;  %v736_v21 = vpop.f32.mrb[68].mxu1  ;;  %v1174_v46 = vpop.f32.mrb[70].mxu0 }
 0x1a4   :  { %1718 = vlog2.f32 %v1282_v15  ;;  %v1262_v17 = vadd.f32 %v1241_v5, %v1220_v14  ;;  %v1170_v19 = vadd.f32 %v1169_v41, %v736_v21  ;;  %v738_v20 = vpop.f32.mrb[69].mxu1  ;;  %v1176_v22 = vpop.f32.mrb[71].mxu0 }
 0x1a5   :  { %1342 = vst [vmem:[#allocation2 + $0x40] sm:$0xff] %v1309_v60 }
 0x1a6   :  { %v1715_v23 = vpop.eup %1714  ;;  %v1283_v27 = vadd.f32 1e-14, %v1262_v17  ;;  %v1242_v28 = vmul.f32 %v1170_v19, %v1170_v19  ;;  %v1226_v17 = vmul.f32 %v2578_v24, %v2578_v24 }
 0x1a7   :  { %v1311_v1 = vmul.f32 0.6931472, %v1715_v23  ;;  %v741_v29 = vpop.f32.mrb[70].mxu1  ;;  %v1179_v51 = vpop.f32.mrb[72].mxu0 }
 0x1a8   :  { %1720 = vlog2.f32 %v1283_v27  ;;  %v1263_v26 = vadd.f32 %v1242_v28, %v1221_v25  ;;  %v1175_v32 = vadd.f32 %v1174_v46, %v741_v29  ;;  %v743_v33 = vpop.f32.mrb[71].mxu1  ;;  %v1181_v34 = vpop.f32.mrb[73].mxu0 }
 0x1a9   :  { %1343 = vst [vmem:[#allocation2 + $0x48] sm:$0xff] %v1311_v1 }
 0x1aa   :  { %v1717_v35 = vpop.eup %1716  ;;  %v1284_v39 = vadd.f32 1e-14, %v1263_v26  ;;  %v1243_v40 = vmul.f32 %v1175_v32, %v1175_v32 }
 0x1ab   :  { %v1313_v7 = vmul.f32 0.6931472, %v1717_v35  ;;  %v746_v42 = vpop.f32.mrb[72].mxu1  ;;  %v1184_v57 = vpop.f32.mrb[74].mxu0 }
 0x1ac   :  { %1722 = vlog2.f32 %v1284_v39  ;;  %v1264_v43 = vadd.f32 %v1243_v40, %v1222_v38  ;;  %v1180_v31 = vadd.f32 %v1179_v51, %v746_v42  ;;  %v748_v44 = vpop.f32.mrb[73].mxu1  ;;  %v1186_v45 = vpop.f32.mrb[75].mxu0  ;;  %v1227_v51 = vmul.f32 %v2580_v30, %v2580_v30 }
 0x1ad   :  { %1344 = vst [vmem:[#allocation2 + $0x50] sm:$0xff] %v1313_v7  ;;  %v1228_v40 = vmul.f32 %v2582_v37, %v2582_v37 }
 0x1ae   :  { %v1719_v47 = vpop.eup %1718  ;;  %v1285_v49 = vadd.f32 1e-14, %v1264_v43  ;;  %v1244_v50 = vmul.f32 %v1180_v31, %v1180_v31 }
 0x1af   :  { %v1315_v52 = vmul.f32 0.6931472, %v1719_v47  ;;  %v751_v12 = vpop.f32.mrb[74].mxu1  ;;  %v1189_v63 = vpop.f32.mrb[76].mxu0 }
 0x1b0   :  { %1724 = vlog2.f32 %v1285_v49  ;;  %v1265_v53 = vadd.f32 %v1244_v50, %v1223_v48  ;;  %v1185_v54 = vadd.f32 %v1184_v57, %v751_v12  ;;  %v753_v36 = vpop.f32.mrb[75].mxu1  ;;  %v1191_v56 = vpop.f32.mrb[77].mxu0 }
 0x1b1   :  { %1345 = vst [vmem:[#allocation2 + $0x58] sm:$0xff] %v1315_v52 }
 0x1b2   :  { %v1721_v58 = vpop.eup %1720  ;;  %v1286_v61 = vadd.f32 1e-14, %v1265_v53  ;;  %v1245_v62 = vmul.f32 %v1185_v54, %v1185_v54 }
 0x1b3   :  { %v1317_v0 = vmul.f32 0.6931472, %v1721_v58  ;;  %v756_v2 = vpop.f32.mrb[76].mxu1  ;;  %v1194_v6 = vpop.f32.mrb[78].mxu0 }
 0x1b4   :  { %1726 = vlog2.f32 %v1286_v61  ;;  %v1266_v3 = vadd.f32 %v1245_v62, %v1224_v59  ;;  %v1190_v16 = vadd.f32 %v1189_v63, %v756_v2  ;;  %v758_v4 = vpop.f32.mrb[77].mxu1  ;;  %v1196_v41 = vpop.f32.mrb[79].mxu0 }
 0x1b5   :  { %1346 = vst [vmem:[#allocation2 + $0x60] sm:$0xff] %v1317_v0 }
 0x1b6   :  { %v1723_v8 = vpop.eup %1722  ;;  %v1287_v9 = vadd.f32 1e-14, %v1266_v3  ;;  %v1246_v10 = vmul.f32 %v1190_v16, %v1190_v16 }
 0x1b7   :  { %v1319_v11 = vmul.f32 0.6931472, %v1723_v8  ;;  %v761_v14 = vpop.f32.mrb[78].mxu1  ;;  %v1199_v13 = vpop.f32.mrb[80].mxu0 }
 0x1b8   :  { %1728 = vlog2.f32 %v1287_v9  ;;  %v1267_v15 = vadd.f32 %v1246_v10, %v1225_v55  ;;  %v1195_v5 = vadd.f32 %v1194_v6, %v761_v14  ;;  %v763_v60 = vpop.f32.mrb[79].mxu1  ;;  %v1201_v21 = vpop.f32.mrb[81].mxu0 }
 0x1b9   :  { %1347 = vst [vmem:[#allocation2 + $0x68] sm:$0xff] %v1319_v11 }
 0x1ba   :  { %v1725_v46 = vpop.eup %1724  ;;  %v1288_v19 = vadd.f32 1e-14, %v1267_v15  ;;  %v1247_v20 = vmul.f32 %v1195_v5, %v1195_v5 }
 0x1bb   :  { %v1321_v22 = vmul.f32 0.6931472, %v1725_v46  ;;  %v766_v23 = vpop.f32.mrb[80].mxu1  ;;  %v1204_v18 = vpop.f32.mrb[82].mxu0 }
 0x1bc   :  { %1730 = vlog2.f32 %v1288_v19  ;;  %v1268_v25 = vadd.f32 %v1247_v20, %v1226_v17  ;;  %v1200_v27 = vadd.f32 %v1199_v13, %v766_v23  ;;  %v768_v28 = vpop.f32.mrb[81].mxu1  ;;  %v1206_v1 = vpop.f32.mrb[83].mxu0 }
 0x1bd   :  { %1348 = vst [vmem:[#allocation2 + $0x70] sm:$0xff] %v1321_v22 }
 0x1be   :  { %v1727_v29 = vpop.eup %1726  ;;  %v1289_v26 = vadd.f32 1e-14, %v1268_v25  ;;  %v1248_v32 = vmul.f32 %v1200_v27, %v1200_v27 }
 0x1bf   :  { %v1323_v33 = vmul.f32 0.6931472, %v1727_v29  ;;  %v771_v34 = vpop.f32.mrb[82].mxu1 }
 0x1c0   :  { %1732 = vlog2.f32 %v1289_v26  ;;  %v1269_v24 = vadd.f32 %v1248_v32, %v1227_v51  ;;  %v1205_v35 = vadd.f32 %v1204_v18, %v771_v34  ;;  %v773_v38 = vpop.f32.mrb[83].mxu1 }
 0x1c1   :  { %1349 = vst [vmem:[#allocation2 + $0x78] sm:$0xff] %v1323_v33 }
 0x1c2   :  { %v1729_v39 = vpop.eup %1728  ;;  %v1290_v7 = vadd.f32 1e-14, %v1269_v24  ;;  %v1249_v42 = vmul.f32 %v1205_v35, %v1205_v35 }
 0x1c3   :  { %v1325_v57 = vmul.f32 0.6931472, %v1729_v39 }
 0x1c4   :  { %1734 = vlog2.f32 %v1290_v7  ;;  %v1270_v43 = vadd.f32 %v1249_v42, %v1228_v40 }
 0x1c5   :  { %1350 = vst [vmem:[#allocation2 + $0x80] sm:$0xff] %v1325_v57 }
 0x1c6   :  { %v1731_v30 = vpop.eup %1730  ;;  %v1291_v31 = vadd.f32 1e-14, %v1270_v43 }
 0x1c7   :  { %v1327_v44 = vmul.f32 0.6931472, %v1731_v30 }
 0x1c8   :  { %1736 = vlog2.f32 %v1291_v31 }
 0x1c9   :  { %1351 = vst [vmem:[#allocation2 + $0x88] sm:$0xff] %v1327_v44 }
 0x1ca   :  { %v1733_v45 = vpop.eup %1732 }
 0x1cb   :  { %v1329_v47 = vmul.f32 0.6931472, %v1733_v45 }
 0x1cd   :  { %1352 = vst [vmem:[#allocation2 + $0x90] sm:$0xff] %v1329_v47 }
 0x1ce   :  { %v1735_v48 = vpop.eup %1734 }
 0x1cf   :  { %v1331_v49 = vmul.f32 0.6931472, %v1735_v48 }
 0x1d1   :  { %1353 = vst [vmem:[#allocation2 + $0x98] sm:$0xff] %v1331_v49 }
 0x1d2   :  { %v1737_v37 = vpop.eup %1736 }
 0x1d3   :  { %v1333_v50 = vmul.f32 0.6931472, %v1737_v37 }
 0x1d5   :  { %1354 = vst [vmem:[#allocation2 + $0xa0] sm:$0xff] %v1333_v50 }
 0x1d6   :  { %1749 = shalt.err (!%p1746_p4)
}
 0x1d7   :  { %s1750_s16 = scalar_lea.hbm %s2641_s3, 2688 }
 0x1d8   :  { %p1751_p5 = scmp.ne.s32.totalorder %s2641_s3, %s1750_s16  ;;  %p1754_p6 = scmp.lt.u32.totalorder %s1750_s16, %s2641_s3 }
 0x1da   :  { %p1756_p7 = pnand %p1754_p6, %p1751_p5 }
 0x1dc   :  { %1759 = shalt.err (!%p1756_p7)
}
 0x1dd   :  { %s1763_s21 = smov 128   ;;  %s1764_s22 = smov 8  }
 0x1de   :  { %1366 = dma.vmem_to_hbm [thread:$0]  %s1361_s12, 2688, %s2641_s3, [#allocation3], %s1763_s21, %s1763_s21, %s1764_s22  }
 0x1df   :  { %1760 = dma.done.wait [#allocation3], 2688  }
 0x1e0   :  { %1761 = vsyncadd [#allocation3], 4294964608 }
 0x1e1   :  { %1370 = vsyncpa [#allocation3], 1 }

</bundles_post_ra>
